<compile_context>
chip_gen: v7x
topology: tpu7x:2x2x1
jax: 0.10.0
libtpu: 0.0.40
codegen_flags: <defaults>
</compile_context>

<pallas_src>
import functools

import jax
import jax.numpy as jnp
from jax import lax
from jax.experimental import pallas as pl
from jax.experimental.pallas import tpu as pltpu

BN_EPS = 1e-5


# ----------------------------------------------------------------------------
# Small static helpers (trace-time Python only).
# ----------------------------------------------------------------------------
def _round_up(x, m):
    return ((x + m - 1) // m) * m


def _largest_tile(n_lanes, max_lanes):
    """Largest divisor d of n_lanes with d <= max_lanes (d >= 1 always)."""
    best = 1
    for d in range(1, n_lanes + 1):
        if n_lanes % d == 0 and d <= max_lanes:
            best = d
    return best


def _choose_padded_features(F, target_tk=4096, max_extra_tiles=64):
    """Pick a lane-aligned padded feature count Fp >= F such that Fp admits a
    K tile (multiple of 128, <= target_tk) dividing it evenly, trading extra
    padded bytes against per-grid-step overhead (~0.35 us ~= 256 K-rows of
    bf16 w0 bandwidth)."""
    base = _round_up(F, 128)
    max_lanes = max(1, target_tk // 128)
    best_fp, best_cost = base, None
    for fp in range(base, base + 128 * max_extra_tiles + 1, 128):
        tk = 128 * _largest_tile(fp // 128, max_lanes)
        cost = fp + (fp // tk) * 256
        if best_cost is None or cost < best_cost:
            best_fp, best_cost = fp, cost
    return best_fp


# ----------------------------------------------------------------------------
# Kernel
# ----------------------------------------------------------------------------
def _mlp_kernel(x_ref, w0_ref, b0_ref, w1_ref, b1_ref, w2_ref, b2_ref,
                w3_ref, b3_ref, o_ref, acc_ref):
    k = pl.program_id(1)

    @pl.when(k == 0)
    def _init():
        acc_ref[...] = jnp.zeros_like(acc_ref)

    # fc0 partial product for this K tile (bf16 x bf16 -> f32 accumulate).
    acc_ref[...] += jnp.dot(x_ref[...], w0_ref[...],
                            preferred_element_type=jnp.float32)

    @pl.when(k == pl.num_programs(1) - 1)
    def _epilogue():
        h = jnp.maximum(acc_ref[...] + b0_ref[...], 0.0).astype(jnp.bfloat16)
        # Dropout(p=0.5) is identity in eval mode.
        h = jnp.maximum(
            jnp.dot(h, w1_ref[...], preferred_element_type=jnp.float32)
            + b1_ref[...], 0.0).astype(jnp.bfloat16)
        h = jnp.maximum(
            jnp.dot(h, w2_ref[...], preferred_element_type=jnp.float32)
            + b2_ref[...], 0.0).astype(jnp.bfloat16)
        o_ref[...] = (jnp.dot(h, w3_ref[...], preferred_element_type=jnp.float32)
                      + b3_ref[...]).astype(o_ref.dtype)


# ----------------------------------------------------------------------------
# Parameter preparation: fold BN into fc0, cast weights to bf16, pad.
# ----------------------------------------------------------------------------
def prepare_params(params, num_classes=9, target_tk=4096):
    """Raw params -> kernel-ready params.

    Raw layout (torch-equivalent, Linear weights pre-transposed to (in, out)):
      gamma, beta, running_mean, running_var : (F,)
      w0 (F, 784), b0 (784,), w1 (784, 512), b1 (512,),
      w2 (512, 256), b2 (256,), w3 (256, C), b3 (C,)
    """
    (gamma, beta, mean, var, w0, b0, w1, b1, w2, b2, w3, b3) = params
    f32 = jnp.float32
    gamma = jnp.asarray(gamma, f32).reshape(-1)
    beta = jnp.asarray(beta, f32).reshape(-1)
    mean = jnp.asarray(mean, f32).reshape(-1)
    var = jnp.asarray(var, f32).reshape(-1)
    w0 = jnp.asarray(w0, f32)
    b0 = jnp.asarray(b0, f32).reshape(-1)

    # Fold BatchNorm (inference) into fc0: y = (x*scale + shift) @ w0 + b0
    scale = gamma * lax.rsqrt(var + BN_EPS)
    shift = beta - mean * scale
    w0f = w0 * scale[:, None]
    b0f = b0 + shift @ w0

    F = w0f.shape[0]
    Fp = _choose_padded_features(F, target_tk)
    w0p = jnp.pad(w0f, ((0, Fp - F), (0, 0))).astype(jnp.bfloat16)

    cp = _round_up(num_classes, 128)
    w3p = jnp.pad(jnp.asarray(w3, f32),
                  ((0, 0), (0, cp - num_classes))).astype(jnp.bfloat16)
    b3p = jnp.pad(jnp.asarray(b3, f32).reshape(-1), (0, cp - num_classes))

    return (w0p, b0f.reshape(1, -1),
            jnp.asarray(w1, f32).astype(jnp.bfloat16),
            jnp.asarray(b1, f32).reshape(1, -1),
            jnp.asarray(w2, f32).astype(jnp.bfloat16),
            jnp.asarray(b2, f32).reshape(1, -1),
            w3p, b3p.reshape(1, -1))


# ----------------------------------------------------------------------------
# Forward
# ----------------------------------------------------------------------------
@functools.partial(jax.jit,
                   static_argnames=("num_classes", "target_tk", "batch_tile"))
def mlp_forward(non_ecg, ecg, prepared, num_classes=9, target_tk=4096,
                batch_tile=256):
    """non_ecg: (B, F_non), ecg: (B, C, T) -> logits (B, num_classes).

    target_tk: K tile for the fc0 weight stream (multiple of 128). ~4096 is a
    good default for v7x/v5e; v6e (128 MiB VMEM) can use 8192-16384.
    """
    (w0, b0, w1, b1, w2, b2, w3, b3) = prepared
    B = ecg.shape[0]

    # Glue: flatten + concat, exactly x.view(B, -1); cat((non_ecg, x), dim=1).
    x = jnp.concatenate([non_ecg.astype(jnp.float32),
                         ecg.reshape(B, -1).astype(jnp.float32)], axis=1)
    x = x.astype(jnp.bfloat16)
    F = x.shape[1]

    Fp, H0 = w0.shape           # padded features, 784
    H1 = w1.shape[1]            # 512
    H2 = w2.shape[1]            # 256
    Cp = w3.shape[1]            # padded classes (multiple of 128)

    tk = 128 * _largest_tile(Fp // 128, max(1, target_tk // 128))
    tb = _round_up(min(B, batch_tile), 8)
    Bp = _round_up(B, tb)

    x = jnp.pad(x, ((0, Bp - B), (0, Fp - F)))

    grid = (Bp // tb, Fp // tk)

    in_specs = [
        pl.BlockSpec((tb, tk), lambda b, k: (b, k)),    # x (streamed over K)
        pl.BlockSpec((tk, H0), lambda b, k: (k, 0)),    # w0 (streamed over K)
        pl.BlockSpec((1, H0), lambda b, k: (0, 0)),     # b0 (resident)
        pl.BlockSpec((H0, H1), lambda b, k: (0, 0)),    # w1 (resident)
        pl.BlockSpec((1, H1), lambda b, k: (0, 0)),     # b1
        pl.BlockSpec((H1, H2), lambda b, k: (0, 0)),    # w2
        pl.BlockSpec((1, H2), lambda b, k: (0, 0)),     # b2
        pl.BlockSpec((H2, Cp), lambda b, k: (0, 0)),    # w3
        pl.BlockSpec((1, Cp), lambda b, k: (0, 0)),     # b3
    ]
    out_specs = pl.BlockSpec((tb, Cp), lambda b, k: (b, 0))

    # Honest VMEM budget: double-buffered streams + resident small weights +
    # accumulator, with 2x headroom, clamped to [32 MiB, 48 MiB] (v7x safe).
    vmem_bytes = (2 * tb * tk * 2
                  + 2 * tk * H0 * 2
                  + 2 * (H0 * H1 + H1 * H2 + H2 * Cp) * 2
                  + 2 * (H0 + H1 + H2 + Cp) * 4
                  + tb * H0 * 4
                  + 2 * tb * Cp * 4)
    vmem_limit = int(min(48 << 20, max(32 << 20, 2 * vmem_bytes)))

    out = pl.pallas_call(
        _mlp_kernel,
        out_shape=jax.ShapeDtypeStruct((Bp, Cp), jnp.float32),
        grid=grid,
        in_specs=in_specs,
        out_specs=out_specs,
        scratch_shapes=[pltpu.VMEM((tb, H0), jnp.float32)],
        compiler_params=pltpu.CompilerParams(
            dimension_semantics=("parallel", "arbitrary"),
            vmem_limit_bytes=vmem_limit),
    )(x, w0, b0, w1, b1, w2, b2, w3, b3)

    return out[:B, :num_classes]


# ----------------------------------------------------------------------------
# Init + references
# ----------------------------------------------------------------------------
def init_params(key, count_of_features, num_classes=9):
    """Deterministic init mirroring the PyTorch module's shapes.

    Linear weights are stored as (in, out) = transpose of torch's (out, in).
    BatchNorm stats are randomized (instead of the fresh-module 1/0/0/1) so
    the BN-folding path is actually exercised by the correctness check.
    """
    dims = [(count_of_features, 784), (784, 512), (512, 256),
            (256, num_classes)]
    keys = jax.random.split(key, 2 * len(dims) + 4)
    gamma = jax.random.uniform(keys[0], (count_of_features,), jnp.float32,
                               minval=0.5, maxval=1.5)
    beta = 0.1 * jax.random.normal(keys[1], (count_of_features,), jnp.float32)
    mean = 0.1 * jax.random.normal(keys[2], (count_of_features,), jnp.float32)
    var = jax.random.uniform(keys[3], (count_of_features,), jnp.float32,
                             minval=0.5, maxval=1.5)
    params = [gamma, beta, mean, var]
    for i, (fan_in, fan_out) in enumerate(dims):
        bound = 1.0 / (fan_in ** 0.5)
        w = jax.random.uniform(keys[4 + 2 * i], (fan_in, fan_out), jnp.float32,
                               minval=-bound, maxval=bound)
        b = jax.random.uniform(keys[5 + 2 * i], (fan_out,), jnp.float32,
                               minval=-bound, maxval=bound)
        params += [w, b]
    return tuple(params)


def _reference_forward(non_ecg, ecg, params):
    """Pure-JAX f32 reference with original (unfolded) semantics."""
    (gamma, beta, mean, var, w0, b0, w1, b1, w2, b2, w3, b3) = params
    B = ecg.shape[0]
    hi = lax.Precision.HIGHEST
    x = jnp.concatenate([non_ecg, ecg.reshape(B, -1)], axis=1).astype(jnp.float32)
    x = (x - mean) * (gamma / jnp.sqrt(var + BN_EPS)) + beta
    x = jnp.maximum(jnp.dot(x, w0, precision=hi) + b0, 0.0)
    x = jnp.maximum(jnp.dot(x, w1, precision=hi) + b1, 0.0)
    x = jnp.maximum(jnp.dot(x, w2, precision=hi) + b2, 0.0)
    return jnp.dot(x, w3, precision=hi) + b3


def _reference_forward_prepared(non_ecg, ecg, prepared, num_classes):
    """Reference matching the kernel's bf16-weight / f32-accumulate numerics."""
    (w0, b0, w1, b1, w2, b2, w3, b3) = prepared
    B = ecg.shape[0]
    hi = lax.Precision.HIGHEST
    f32 = jnp.float32
    x = jnp.concatenate([non_ecg, ecg.reshape(B, -1)], axis=1).astype(f32)
    x = x.astype(jnp.bfloat16).astype(f32)
    F = x.shape[1]
    h = jnp.maximum(jnp.dot(x, w0[:F].astype(f32), precision=hi) + b0, 0.0)
    h = h.astype(jnp.bfloat16).astype(f32)
    h = jnp.maximum(jnp.dot(h, w1.astype(f32), precision=hi) + b1, 0.0)
    h = h.astype(jnp.bfloat16).astype(f32)
    h = jnp.maximum(jnp.dot(h, w2.astype(f32), precision=hi) + b2, 0.0)
    h = h.astype(jnp.bfloat16).astype(f32)
    return (jnp.dot(h, w3.astype(f32), precision=hi) + b3)[:, :num_classes]


# ----------------------------------------------------------------------------
# Demo / self-test
# ----------------------------------------------------------------------------
if __name__ == "__main__":
    # Small shapes consistent with the module: ecg (B, C, T) flattened and
    # concatenated with non_ecg.  (Real model: C=12, T=2500, non_ecg=2.)
    B, C, T, F_NON = 2, 4, 64, 2
    NUM_CLASSES = 9
    count_of_features = C * T + F_NON          # 258
    TARGET_TK = 128                            # small tile -> exercises K grid

    key = jax.random.PRNGKey(0)
    k_ecg, k_non, k_params = jax.random.split(key, 3)
    ecg = jax.random.normal(k_ecg, (B, C, T), jnp.float32)
    non_ecg = jax.random.normal(k_non, (B, F_NON), jnp.float32)
    params = init_params(k_params, count_of_features, NUM_CLASSES)

    prepared = prepare_params(params, num_classes=NUM_CLASSES,
                              target_tk=TARGET_TK)

    out = mlp_forward(non_ecg, ecg, prepared, num_classes=NUM_CLASSES,
                      target_tk=TARGET_TK)
    out = jax.block_until_ready(out)

    ref_bf16 = _reference_forward_prepared(non_ecg, ecg, prepared, NUM_CLASSES)
    ref_f32 = _reference_forward(non_ecg, ecg, params)

    assert out.shape == (B, NUM_CLASSES)
    assert jnp.allclose(out, ref_bf16, atol=2e-3, rtol=2e-3), \
        "mismatch vs bf16-matched reference"
    assert jnp.allclose(out, ref_f32, atol=5e-2, rtol=5e-2), \
        "mismatch vs f32 reference"

    print("KERNEL_OK")
</pallas_src>

<mosaic_0001>
module attributes {stable_mosaic.version = 11 : i64} {
  func.func @_mlp_kernel(%arg0: i32, %arg1: i32, %arg2: memref<8x128xbf16, #tpu.memory_space<vmem>>, %arg3: memref<128x784xbf16, #tpu.memory_space<vmem>>, %arg4: memref<1x784xf32, #tpu.memory_space<vmem>>, %arg5: memref<784x512xbf16, #tpu.memory_space<vmem>>, %arg6: memref<1x512xf32, #tpu.memory_space<vmem>>, %arg7: memref<512x256xbf16, #tpu.memory_space<vmem>>, %arg8: memref<1x256xf32, #tpu.memory_space<vmem>>, %arg9: memref<256x128xbf16, #tpu.memory_space<vmem>>, %arg10: memref<1x128xf32, #tpu.memory_space<vmem>>, %arg11: memref<8x128xf32, #tpu.memory_space<vmem>>, %arg12: memref<8x784xf32, #tpu.memory_space<vmem>>) attributes {dimension_semantics = [#tpu.dimension_semantics<parallel>, #tpu.dimension_semantics<arbitrary>], iteration_bounds = array<i64: 1, 3>, scalar_prefetch = 0 : i64, scratch_operands = 1 : i64, tpu.core_type = #tpu.core_type<tc>, window_params = [{transform_indices = @transform_0, window_bounds = array<i64: 8, 128>}, {transform_indices = @transform_1, window_bounds = array<i64: 128, 784>}, {pipeline_mode = #tpu.pipeline_mode<synchronous>, transform_indices = @transform_2, window_bounds = array<i64: 1, 784>}, {pipeline_mode = #tpu.pipeline_mode<synchronous>, transform_indices = @transform_3, window_bounds = array<i64: 784, 512>}, {pipeline_mode = #tpu.pipeline_mode<synchronous>, transform_indices = @transform_4, window_bounds = array<i64: 1, 512>}, {pipeline_mode = #tpu.pipeline_mode<synchronous>, transform_indices = @transform_5, window_bounds = array<i64: 512, 256>}, {pipeline_mode = #tpu.pipeline_mode<synchronous>, transform_indices = @transform_6, window_bounds = array<i64: 1, 256>}, {pipeline_mode = #tpu.pipeline_mode<synchronous>, transform_indices = @transform_7, window_bounds = array<i64: 256, 128>}, {pipeline_mode = #tpu.pipeline_mode<synchronous>, transform_indices = @transform_8, window_bounds = array<i64: 1, 128>}, {transform_indices = @transform_9, window_bounds = array<i64: 8, 128>}]} {
    %c0_i32 = arith.constant 0 : i32
    %0 = arith.cmpi eq, %arg1, %c0_i32 : i32
    %1 = arith.extui %0 : i1 to i32
    %c0_i32_0 = arith.constant 0 : i32
    %2 = arith.cmpi ne, %1, %c0_i32_0 : i32
    scf.if %2 {
      %cst_9 = arith.constant 0.000000e+00 : f32
      %12 = vector.broadcast %cst_9 : f32 to vector<8x784xf32>
      %c0_10 = arith.constant 0 : index
      %c0_11 = arith.constant 0 : index
      %13 = vector.load %arg12[%c0_10, %c0_11] : memref<8x784xf32, #tpu.memory_space<vmem>>, vector<8x784xf32>
      tpu.vector_store %arg12[%c0_10, %c0_11], %12 {strides = array<i32>} : memref<8x784xf32, #tpu.memory_space<vmem>>, vector<8x784xf32>,
    } else {
    }
    %c0 = arith.constant 0 : index
    %c0_1 = arith.constant 0 : index
    %3 = vector.load %arg12[%c0, %c0_1] : memref<8x784xf32, #tpu.memory_space<vmem>>, vector<8x784xf32>
    %c0_2 = arith.constant 0 : index
    %c0_3 = arith.constant 0 : index
    %4 = vector.load %arg2[%c0_2, %c0_3] : memref<8x128xbf16, #tpu.memory_space<vmem>>, vector<8x128xbf16>
    %c0_4 = arith.constant 0 : index
    %c0_5 = arith.constant 0 : index
    %5 = vector.load %arg3[%c0_4, %c0_5] : memref<128x784xbf16, #tpu.memory_space<vmem>>, vector<128x784xbf16>
    %cst = arith.constant dense<0.000000e+00> : vector<8x784xf32>
    %6 = tpu.matmul %4, %5, %cst {dimension_numbers = #tpu.dot_dimension_numbers<[1], [0], [0], [1], [0, 0, 1, 1], [], []>} : vector<8x128xbf16>, vector<128x784xbf16>, vector<8x784xf32> -> vector<8x784xf32>
    %7 = arith.addf %3, %6 : vector<8x784xf32>
    %c0_6 = arith.constant 0 : index
    %c0_7 = arith.constant 0 : index
    %8 = vector.load %arg12[%c0_6, %c0_7] : memref<8x784xf32, #tpu.memory_space<vmem>>, vector<8x784xf32>
    tpu.vector_store %arg12[%c0_6, %c0_7], %7 {strides = array<i32>} : memref<8x784xf32, #tpu.memory_space<vmem>>, vector<8x784xf32>,
    %c2_i32 = arith.constant 2 : i32
    %9 = arith.cmpi eq, %arg1, %c2_i32 : i32
    %10 = arith.extui %9 : i1 to i32
    %c0_i32_8 = arith.constant 0 : i32
    %11 = arith.cmpi ne, %10, %c0_i32_8 : i32
    scf.if %11 {
      %c0_9 = arith.constant 0 : index
      %c0_10 = arith.constant 0 : index
      %12 = vector.load %arg12[%c0_9, %c0_10] : memref<8x784xf32, #tpu.memory_space<vmem>>, vector<8x784xf32>
      %c0_11 = arith.constant 0 : index
      %c0_12 = arith.constant 0 : index
      %13 = vector.load %arg4[%c0_11, %c0_12] : memref<1x784xf32, #tpu.memory_space<vmem>>, vector<1x784xf32>
      %14 = vector.broadcast %13 : vector<1x784xf32> to vector<8x784xf32>
      %15 = arith.addf %12, %14 : vector<8x784xf32>
      %cst_13 = arith.constant 0.000000e+00 : f32
      %16 = vector.broadcast %cst_13 : f32 to vector<8x784xf32>
      %17 = arith.maximumf %15, %16 : vector<8x784xf32>
      %18 = arith.truncf %17 : vector<8x784xf32> to vector<8x784xbf16>
      %c0_14 = arith.constant 0 : index
      %c0_15 = arith.constant 0 : index
      %19 = vector.load %arg5[%c0_14, %c0_15] : memref<784x512xbf16, #tpu.memory_space<vmem>>, vector<784x512xbf16>
      %cst_16 = arith.constant dense<0.000000e+00> : vector<8x512xf32>
      %20 = tpu.matmul %18, %19, %cst_16 {dimension_numbers = #tpu.dot_dimension_numbers<[1], [0], [0], [1], [0, 0, 1, 1], [], []>} : vector<8x784xbf16>, vector<784x512xbf16>, vector<8x512xf32> -> vector<8x512xf32>
      %c0_17 = arith.constant 0 : index
      %c0_18 = arith.constant 0 : index
      %21 = vector.load %arg6[%c0_17, %c0_18] : memref<1x512xf32, #tpu.memory_space<vmem>>, vector<1x512xf32>
      %22 = vector.broadcast %21 : vector<1x512xf32> to vector<8x512xf32>
      %23 = arith.addf %20, %22 : vector<8x512xf32>
      %cst_19 = arith.constant 0.000000e+00 : f32
      %24 = vector.broadcast %cst_19 : f32 to vector<8x512xf32>
      %25 = arith.maximumf %23, %24 : vector<8x512xf32>
      %26 = arith.truncf %25 : vector<8x512xf32> to vector<8x512xbf16>
      %c0_20 = arith.constant 0 : index
      %c0_21 = arith.constant 0 : index
      %27 = vector.load %arg7[%c0_20, %c0_21] : memref<512x256xbf16, #tpu.memory_space<vmem>>, vector<512x256xbf16>
      %cst_22 = arith.constant dense<0.000000e+00> : vector<8x256xf32>
      %28 = tpu.matmul %26, %27, %cst_22 {dimension_numbers = #tpu.dot_dimension_numbers<[1], [0], [0], [1], [0, 0, 1, 1], [], []>} : vector<8x512xbf16>, vector<512x256xbf16>, vector<8x256xf32> -> vector<8x256xf32>
      %c0_23 = arith.constant 0 : index
      %c0_24 = arith.constant 0 : index
      %29 = vector.load %arg8[%c0_23, %c0_24] : memref<1x256xf32, #tpu.memory_space<vmem>>, vector<1x256xf32>
      %30 = vector.broadcast %29 : vector<1x256xf32> to vector<8x256xf32>
      %31 = arith.addf %28, %30 : vector<8x256xf32>
      %cst_25 = arith.constant 0.000000e+00 : f32
      %32 = vector.broadcast %cst_25 : f32 to vector<8x256xf32>
      %33 = arith.maximumf %31, %32 : vector<8x256xf32>
      %34 = arith.truncf %33 : vector<8x256xf32> to vector<8x256xbf16>
      %c0_26 = arith.constant 0 : index
      %c0_27 = arith.constant 0 : index
      %35 = vector.load %arg9[%c0_26, %c0_27] : memref<256x128xbf16, #tpu.memory_space<vmem>>, vector<256x128xbf16>
      %cst_28 = arith.constant dense<0.000000e+00> : vector<8x128xf32>
      %36 = tpu.matmul %34, %35, %cst_28 {dimension_numbers = #tpu.dot_dimension_numbers<[1], [0], [0], [1], [0, 0, 1, 1], [], []>} : vector<8x256xbf16>, vector<256x128xbf16>, vector<8x128xf32> -> vector<8x128xf32>
      %c0_29 = arith.constant 0 : index
      %c0_30 = arith.constant 0 : index
      %37 = vector.load %arg10[%c0_29, %c0_30] : memref<1x128xf32, #tpu.memory_space<vmem>>, vector<1x128xf32>
      %38 = vector.broadcast %37 : vector<1x128xf32> to vector<8x128xf32>
      %39 = arith.addf %36, %38 : vector<8x128xf32>
      %c0_31 = arith.constant 0 : index
      %c0_32 = arith.constant 0 : index
      %40 = vector.load %arg11[%c0_31, %c0_32] : memref<8x128xf32, #tpu.memory_space<vmem>>, vector<8x128xf32>
      tpu.vector_store %arg11[%c0_31, %c0_32], %39 {strides = array<i32>} : memref<8x128xf32, #tpu.memory_space<vmem>>, vector<8x128xf32>,
    } else {
    }
    return
  }
  func.func @transform_0(%arg0: i32, %arg1: i32) -> (i32, i32) {
    %c0_i32 = arith.constant 0 : i32
    return %arg0, %arg1 : i32, i32
  }
  func.func @transform_1(%arg0: i32, %arg1: i32) -> (i32, i32) {
    %c0_i32 = arith.constant 0 : i32
    %c0_i32_0 = arith.constant 0 : i32
    return %arg1, %c0_i32 : i32, i32
  }
  func.func @transform_2(%arg0: i32, %arg1: i32) -> (i32, i32) {
    %c0_i32 = arith.constant 0 : i32
    %c0_i32_0 = arith.constant 0 : i32
    %c0_i32_1 = arith.constant 0 : i32
    return %c0_i32, %c0_i32_0 : i32, i32
  }
  func.func @transform_3(%arg0: i32, %arg1: i32) -> (i32, i32) {
    %c0_i32 = arith.constant 0 : i32
    %c0_i32_0 = arith.constant 0 : i32
    %c0_i32_1 = arith.constant 0 : i32
    return %c0_i32, %c0_i32_0 : i32, i32
  }
  func.func @transform_4(%arg0: i32, %arg1: i32) -> (i32, i32) {
    %c0_i32 = arith.constant 0 : i32
    %c0_i32_0 = arith.constant 0 : i32
    %c0_i32_1 = arith.constant 0 : i32
    return %c0_i32, %c0_i32_0 : i32, i32
  }
  func.func @transform_5(%arg0: i32, %arg1: i32) -> (i32, i32) {
    %c0_i32 = arith.constant 0 : i32
    %c0_i32_0 = arith.constant 0 : i32
    %c0_i32_1 = arith.constant 0 : i32
    return %c0_i32, %c0_i32_0 : i32, i32
  }
  func.func @transform_6(%arg0: i32, %arg1: i32) -> (i32, i32) {
    %c0_i32 = arith.constant 0 : i32
    %c0_i32_0 = arith.constant 0 : i32
    %c0_i32_1 = arith.constant 0 : i32
    return %c0_i32, %c0_i32_0 : i32, i32
  }
  func.func @transform_7(%arg0: i32, %arg1: i32) -> (i32, i32) {
    %c0_i32 = arith.constant 0 : i32
    %c0_i32_0 = arith.constant 0 : i32
    %c0_i32_1 = arith.constant 0 : i32
    return %c0_i32, %c0_i32_0 : i32, i32
  }
  func.func @transform_8(%arg0: i32, %arg1: i32) -> (i32, i32) {
    %c0_i32 = arith.constant 0 : i32
    %c0_i32_0 = arith.constant 0 : i32
    %c0_i32_1 = arith.constant 0 : i32
    return %c0_i32, %c0_i32_0 : i32, i32
  }
  func.func @transform_9(%arg0: i32, %arg1: i32) -> (i32, i32) {
    %c0_i32 = arith.constant 0 : i32
    %c0_i32_0 = arith.constant 0 : i32
    return %arg0, %c0_i32 : i32, i32
  }
}

</mosaic_0001>

<bundles_post_ra>
// kernel: mlp_forward.1
= control target key start
LH: loop header
LB: loop body
LE: loop exit
PB: predicated region body
PF: predicated region fallthrough
CT: control target
= control target key end

     0   :  { %s4294_s30 = smov 0   ;;  %s4296_s10 = smov 0   ;;  %s5324_s0 = inlined_call_operand.vmem [shape: bf16[8,384], index: 0, kind: input, shape index: {}]   ;;  %s5325_s1 = inlined_call_operand.vmem [shape: bf16[384,784], index: 1, kind: input, shape index: {}]   ;;  %s5326_s2 = inlined_call_operand.vmem [shape: f32[1,784], index: 2, kind: input, shape index: {}]   ;;  %s5327_s3 = inlined_call_operand.vmem [shape: bf16[784,512], index: 3, kind: input, shape index: {}]   ;;  %s5328_s4 = inlined_call_operand.vmem [shape: f32[1,512], index: 4, kind: input, shape index: {}]   ;;  %s5329_s5 = inlined_call_operand.vmem [shape: bf16[512,256], index: 5, kind: input, shape index: {}]   ;;  %s5330_s6 = inlined_call_operand.vmem [shape: f32[1,256], index: 6, kind: input, shape index: {}]   ;;  %s5331_s7 = inlined_call_operand.vmem [shape: bf16[256,128], index: 7, kind: input, shape index: {}]   ;;  %s5332_s8 = inlined_call_operand.vmem [shape: f32[1,128], index: 8, kind: input, shape index: {}]   ;;  %s5333_s9 = inlined_call_operand.vmem [shape: f32[8,128], index: 9, kind: output, shape index: {}]  }
   0x1   :  { %s4298_s11 = smov 0  }
   0x2 LB: > { %s28_s12 = sadd.s32 1, %s4233_s10  ;;  %p3274_p0 = scmp.ge.s32.totalorder %s4237_s11, 1  ;;  %s4237_s11 = sphi %s4298_s11, %s19_s11   ;;  %s4233_s10 = sphi %s4296_s10, %s5335_s10   ;;  %s4229_s30 = sphi %s4294_s30, %s5334_s30  }
   0x3   : > { %p29_p1 = scmp.ge.s32.totalorder %s28_s12, 3  ;;  %p316_p2 = scmp.lt.s32.totalorder %s4237_s11, 4 }
   0x5   : > { %s5337_s12 = smov (%p29_p1, %s28_s12), 0  ;;  %p317_p3 = pnand %p3274_p0, %p316_p2 }
   0x6   : > { %p362_p4 = scmp.lt.s32.totalorder (!%p317_p3), %s4229_s30, 2  ;;  %s3276_s13 = sshll.u32 (!%p317_p3), %s4229_s30, 4 }
   0x7   : > { %320 = sbr.rel (%p317_p3) target bundleno = 1172 (0x494), region = 56  ;;  %p369_p5 = scmp.lt.s32.totalorder (!%p317_p3), %s3276_s13, 47 }
   0x8   : > { %p3278_p6 = scmp.ne.s32.totalorder (!%p317_p3), %s4229_s30, 0 }
   0xe   : > { %s363_s14 = scalar_select %p362_p4, %s4229_s30, 2 }
   0xf   : > { %s5339_s13 = smov (!%p369_p5, %s3276_s13), 47  ;;  %383 = sbr.rel (%p3278_p6) target bundleno = 22 (0x16), region = 60 }
  0x10   : > { %s3275_s15 = sshll.u32 %s363_s14, 2  ;;  %s3699_s19 = smul.u32 28, %s5339_s13  ;;  %vm390_vm0 = vcmask (!%p3278_p6), 130048   ;;  %v4239_v0 = vmov (!%p3278_p6), 0.0  }
  0x11   : > { %s4320_s18 = scalar_lea.vmem %s5324_s0, %s3275_s15  ;;  %384 = vst [vmem:[#allocation2] sm:$0xff] (!%p3278_p6), %v4239_v0  ;;  %385 = vst [vmem:[#allocation2 + $0x8] sm:$0xff] (!%p3278_p6), %v4239_v0 }
  0x12   : > { %s4325_s22 = scalar_lea.vmem %s5325_s1, %s3699_s19  ;;  %386 = vst [vmem:[#allocation2 + $0x10] sm:$0xff] (!%p3278_p6), %v4239_v0  ;;  %387 = vst [vmem:[#allocation2 + $0x18] sm:$0xff] (!%p3278_p6), %v4239_v0 }
  0x13   : > { %388 = vst [vmem:[#allocation2 + $0x20] sm:$0xff] (!%p3278_p6), %v4239_v0  ;;  %389 = vst [vmem:[#allocation2 + $0x28] sm:$0xff] (!%p3278_p6), %v4239_v0 }
  0x14   : > { %391 = vst.msk [vmem:[#allocation2 + $0x30] sm:$0xff] (!%p3278_p6), %vm390_vm0, %v4239_v0 }
  0x16 PF: > { %v3729_v1 = vld [vmem:[%s4325_s22 + $0x4] ss:$28 sps:$4 sm:$0xff]   ;;  %v3731_v2 = vld [vmem:[%s4325_s22 + $0xc] ss:$28 sps:$4 sm:$0xff]   ;;  %v4240_v3 = vmov 0   ;;  %v4241_v38 = vmov 0.0  }
  0x17   : > { %784 = vmatprep.mubr.bf16.mxu0 %v4240_v3  ;;  %825 = vmatprep.mubr.bf16.mxu1 %v4240_v3  ;;  %v3733_v4 = vld [vmem:[%s4325_s22] ss:$28 sps:$4 sm:$0xff]   ;;  %v3734_v5 = vld [vmem:[%s4325_s22 + $0x8] ss:$28 sps:$4 sm:$0xff]   ;;  %v3739_v8 = vld [vmem:[%s4325_s22 + $0x38] ss:$28 sps:$4 sm:$0xff]  }
  0x18   : > { %752 = vmatprep.subr.bf16.mxu0 %v3729_v1  ;;  %793 = vmatprep.subr.bf16.mxu1 %v3731_v2  ;;  %v3735_v6 = vld [vmem:[%s4325_s22 + $0x3c] ss:$28 sps:$4 sm:$0xff]   ;;  %v3737_v7 = vld [vmem:[%s4325_s22 + $0x44] ss:$28 sps:$4 sm:$0xff]   ;;  %v3741_v10 = vld [vmem:[%s4325_s22 + $0x74] ss:$28 sps:$4 sm:$0xff]  }
  0x19   : > { %753 = vmatpush1.bf16.msra.mxu0 %v3733_v4  ;;  %794 = vmatpush1.bf16.msra.mxu1 %v3734_v5  ;;  %v3740_v9 = vld [vmem:[%s4325_s22 + $0x40] ss:$28 sps:$4 sm:$0xff]   ;;  %v3745_v12 = vld [vmem:[%s4325_s22 + $0x70] ss:$28 sps:$4 sm:$0xff]   ;;  %v3746_v13 = vld [vmem:[%s4325_s22 + $0x78] ss:$28 sps:$4 sm:$0xff]  }
  0x1a   : > { %754 = vmatprep.subr.bf16.mxu0 %v3735_v6  ;;  %795 = vmatprep.subr.bf16.mxu1 %v3737_v7  ;;  %v3743_v11 = vld [vmem:[%s4325_s22 + $0x7c] ss:$28 sps:$4 sm:$0xff]   ;;  %v3747_v14 = vld [vmem:[%s4325_s22 + $0xac] ss:$28 sps:$4 sm:$0xff]   ;;  %v3749_v15 = vld [vmem:[%s4325_s22 + $0xb4] ss:$28 sps:$4 sm:$0xff]  }
  0x1b   : > { %v3751_v16 = vld [vmem:[%s4325_s22 + $0xa8] ss:$28 sps:$4 sm:$0xff]   ;;  %v3752_v17 = vld [vmem:[%s4325_s22 + $0xb0] ss:$28 sps:$4 sm:$0xff]   ;;  %v3757_v20 = vld [vmem:[%s4325_s22 + $0xe0] ss:$28 sps:$4 sm:$0xff]  }
  0x1c   : > { %v3753_v18 = vld [vmem:[%s4325_s22 + $0xe4] ss:$28 sps:$4 sm:$0xff]   ;;  %v3755_v19 = vld [vmem:[%s4325_s22 + $0xec] ss:$28 sps:$4 sm:$0xff]   ;;  %v3759_v22 = vld [vmem:[%s4325_s22 + $0x11c] ss:$28 sps:$4 sm:$0xff]  }
  0x1d   : > { %755 = vmatpush1.bf16.msra.mxu0 %v3739_v8  ;;  %796 = vmatpush1.bf16.msra.mxu1 %v3740_v9  ;;  %v3758_v21 = vld [vmem:[%s4325_s22 + $0xe8] ss:$28 sps:$4 sm:$0xff]   ;;  %v3763_v24 = vld [vmem:[%s4325_s22 + $0x118] ss:$28 sps:$4 sm:$0xff]   ;;  %v3764_v25 = vld [vmem:[%s4325_s22 + $0x120] ss:$28 sps:$4 sm:$0xff]  }
  0x1e   : > { %756 = vmatprep.subr.bf16.mxu0 %v3741_v10  ;;  %797 = vmatprep.subr.bf16.mxu1 %v3743_v11  ;;  %v3761_v23 = vld [vmem:[%s4325_s22 + $0x124] ss:$28 sps:$4 sm:$0xff]   ;;  %v3765_v26 = vld [vmem:[%s4325_s22 + $0x154] ss:$28 sps:$4 sm:$0xff]   ;;  %v3767_v27 = vld [vmem:[%s4325_s22 + $0x15c] ss:$28 sps:$4 sm:$0xff]  }
  0x1f   : > { %v3769_v28 = vld [vmem:[%s4325_s22 + $0x150] ss:$28 sps:$4 sm:$0xff]   ;;  %v3770_v29 = vld [vmem:[%s4325_s22 + $0x158] ss:$28 sps:$4 sm:$0xff]   ;;  %v3775_v32 = vld [vmem:[%s4325_s22 + $0x188] ss:$28 sps:$4 sm:$0xff]  }
  0x20   : > { %v3771_v30 = vld [vmem:[%s4325_s22 + $0x18c] ss:$28 sps:$4 sm:$0xff]   ;;  %v3773_v31 = vld [vmem:[%s4325_s22 + $0x194] ss:$28 sps:$4 sm:$0xff]   ;;  %v4364_v35 = vld [vmem:[%s4320_s18] sm:$0xf] }
  0x21   : > { %757 = vmatpush1.bf16.msra.mxu0 %v3745_v12  ;;  %798 = vmatpush1.bf16.msra.mxu1 %v3746_v13  ;;  %v3776_v33 = vld [vmem:[%s4325_s22 + $0x190] ss:$28 sps:$4 sm:$0xff]   ;;  %v3780_v37 = vld [vmem:[%s4325_s22 + $0x18] ss:$28 sps:$4 sm:$0xff]   ;;  %v3781_v40 = vld [vmem:[%s4325_s22 + $0x48] ss:$28 sps:$4 sm:$0xff]  }
  0x22   : > { %758 = vmatprep.subr.bf16.mxu0 %v3747_v14  ;;  %799 = vmatprep.subr.bf16.mxu1 %v3749_v15  ;;  %v3779_v34 = vld [vmem:[%s4325_s22 + $0x14] ss:$28 sps:$4 sm:$0xff]   ;;  %v3783_v39 = vld [vmem:[%s4325_s22 + $0x4c] ss:$28 sps:$4 sm:$0xff]   ;;  %v3787_v42 = vld [vmem:[%s4325_s22 + $0x84] ss:$28 sps:$4 sm:$0xff]  }
  0x23   : > { %v3777_v36 = vld [vmem:[%s4325_s22 + $0x10] ss:$28 sps:$4 sm:$0xff]   ;;  %vm4242_vm1 = vmmov 0   ;;  %v3785_v43 = vld [vmem:[%s4325_s22 + $0x80] ss:$28 sps:$4 sm:$0xff]   ;;  %vm928_vm2 = vcmask 130048  }
  0x24   : > { %v3784_v41 = vld [vmem:[%s4325_s22 + $0x50] ss:$28 sps:$4 sm:$0xff]   ;;  %v3788_v44 = vld [vmem:[%s4325_s22 + $0x88] ss:$28 sps:$4 sm:$0xff]   ;;  %v3791_v45 = vld [vmem:[%s4325_s22 + $0xbc] ss:$28 sps:$4 sm:$0xff]  }
  0x25   : > { %759 = vmatpush1.bf16.msra.mxu0 %v3751_v16  ;;  %800 = vmatpush1.bf16.msra.mxu1 %v3752_v17  ;;  %v3789_v46 = vld [vmem:[%s4325_s22 + $0xb8] ss:$28 sps:$4 sm:$0xff]   ;;  %v3792_v47 = vld [vmem:[%s4325_s22 + $0xc0] ss:$28 sps:$4 sm:$0xff]   ;;  %v3793_v49 = vld [vmem:[%s4325_s22 + $0xf0] ss:$28 sps:$4 sm:$0xff]  }
  0x26   : > { %760 = vmatprep.subr.bf16.mxu0 %v3753_v18  ;;  %801 = vmatprep.subr.bf16.mxu1 %v3755_v19  ;;  %v3795_v48 = vld [vmem:[%s4325_s22 + $0xf4] ss:$28 sps:$4 sm:$0xff]   ;;  %v3799_v51 = vld [vmem:[%s4325_s22 + $0x12c] ss:$28 sps:$4 sm:$0xff]   ;;  %v3803_v54 = vld [vmem:[%s4325_s22 + $0x164] ss:$28 sps:$4 sm:$0xff]  }
  0x27   : > { %v3796_v50 = vld [vmem:[%s4325_s22 + $0xf8] ss:$28 sps:$4 sm:$0xff]   ;;  %v3797_v52 = vld [vmem:[%s4325_s22 + $0x128] ss:$28 sps:$4 sm:$0xff]   ;;  %v3800_v53 = vld [vmem:[%s4325_s22 + $0x130] ss:$28 sps:$4 sm:$0xff]  }
  0x28   : > { %v3801_v55 = vld [vmem:[%s4325_s22 + $0x160] ss:$28 sps:$4 sm:$0xff]   ;;  %v3804_v56 = vld [vmem:[%s4325_s22 + $0x168] ss:$28 sps:$4 sm:$0xff]   ;;  %v3805_v58 = vld [vmem:[%s4325_s22 + $0x198] ss:$28 sps:$4 sm:$0xff]  }
  0x29   : > { %761 = vmatpush1.bf16.msra.mxu0 %v3757_v20  ;;  %802 = vmatpush1.bf16.msra.mxu1 %v3758_v21  ;;  %v3807_v57 = vld [vmem:[%s4325_s22 + $0x19c] ss:$28 sps:$4 sm:$0xff]   ;;  %v392_v60 = vld [vmem:[#allocation2] sm:$0xff]  ;;  %v394_v61 = vld [vmem:[#allocation2 + $0x10] sm:$0xff]  ;;  %p3335_p7 = scmp.ne.s32.totalorder %s4229_s30, 2 }
  0x2a   : > { %762 = vmatprep.subr.bf16.mxu0 %v3759_v22  ;;  %803 = vmatprep.subr.bf16.mxu1 %v3761_v23  ;;  %v3808_v59 = vld [vmem:[%s4325_s22 + $0x1a0] ss:$28 sps:$4 sm:$0xff]   ;;  %v393_v62 = vld [vmem:[#allocation2 + $0x8] sm:$0xff]  ;;  %v398_v13 = vld [vmem:[#allocation2 + $0x30] sm:$0xff] }
  0x2b   : > { %v395_v63 = vld [vmem:[#allocation2 + $0x18] sm:$0xff]  ;;  %v396_v12 = vld [vmem:[#allocation2 + $0x20] sm:$0xff]  ;;  %v397_v14 = vld [vmem:[#allocation2 + $0x28] sm:$0xff] }
  0x2d   : > { %763 = vmatpush1.bf16.msra.mxu0 %v3763_v24  ;;  %804 = vmatpush1.bf16.msra.mxu1 %v3764_v25 }
  0x2e   : > { %764 = vmatprep.subr.bf16.mxu0 %v3765_v26  ;;  %805 = vmatprep.subr.bf16.mxu1 %v3767_v27  ;;  %v3809_v26 = vld [vmem:[%s5327_s3 + $0x4] ss:$16 sps:$4 sm:$0xff] (!%p3335_p7)  }
  0x2f   : > { %v3811_v27 = vld [vmem:[%s5327_s3 + $0x204] ss:$16 sps:$4 sm:$0xff] (!%p3335_p7)  }
  0x31   : > { %765 = vmatpush1.bf16.msra.mxu0 %v3769_v28  ;;  %806 = vmatpush1.bf16.msra.mxu1 %v3770_v29  ;;  %v3813_v28 = vld [vmem:[%s5327_s3] ss:$16 sps:$4 sm:$0xff] (!%p3335_p7)  }
  0x32   : > { %766 = vmatprep.subr.bf16.mxu0 %v3771_v30  ;;  %807 = vmatprep.subr.bf16.mxu1 %v3773_v31  ;;  %v3814_v29 = vld [vmem:[%s5327_s3 + $0x200] ss:$16 sps:$4 sm:$0xff] (!%p3335_p7)   ;;  %v3815_v30 = vld [vmem:[%s5327_s3 + $0x24] ss:$16 sps:$4 sm:$0xff] (!%p3335_p7)  }
  0x33   : > { %v3817_v31 = vld [vmem:[%s5327_s3 + $0x224] ss:$16 sps:$4 sm:$0xff] (!%p3335_p7)  }
  0x35   : > { %767 = vmatpush1.bf16.msra.mxu0 %v3775_v32  ;;  %808 = vmatpush1.bf16.msra.mxu1 %v3776_v33  ;;  %v3819_v32 = vld [vmem:[%s5327_s3 + $0x20] ss:$16 sps:$4 sm:$0xff] (!%p3335_p7)  }
  0x36   : > { %834 = vmatprep.subr.bf16.mxu0 %v3779_v34  ;;  %3649 = vmatprep.subr.bf16.mxu1 %v4241_v38  ;;  %v3820_v33 = vld [vmem:[%s5327_s3 + $0x220] ss:$16 sps:$4 sm:$0xff] (!%p3335_p7)   ;;  %v3821_v34 = vld [vmem:[%s5327_s3 + $0x44] ss:$16 sps:$4 sm:$0xff] (!%p3335_p7)  }
  0x38   : > { %785 = vmatmul.mubr.bf16.vlgmr.msra.gmra.mrb[0].mxu0 %v4364_v35  ;;  %826 = vmatmul.mubr.bf16.vlgmr.msra.gmra.mrb[0].mxu1 %v4364_v35 }
  0x39   : > { %835 = vmatpush1.bf16.msra.mxu0 %v3777_v36  ;;  %3650 = vmatpush3.bf16.msra.mxu1 %v3780_v37  ;;  %v3825_v36 = vld [vmem:[%s5327_s3 + $0x40] ss:$16 sps:$4 sm:$0xff] (!%p3335_p7)  }
  0x3a   : > { %836 = vmatprep.subr.bf16.mxu0 %v3783_v39  ;;  %3651 = vmatprep.subr.bf16.mxu1 %v4241_v38  ;;  %v3826_v37 = vld [vmem:[%s5327_s3 + $0x240] ss:$16 sps:$4 sm:$0xff] (!%p3335_p7)   ;;  %v3829_v39 = vld [vmem:[%s5327_s3 + $0x264] ss:$16 sps:$4 sm:$0xff] (!%p3335_p7)  }
  0x3b   : > { %866 = vmatprep.mubr.bf16.mxu0 %v4240_v3  ;;  %3665 = vmatprep.mubr.msk.bf16.mxu1 %vm4242_vm1, %v4241_v38 }
  0x3d   : > { %837 = vmatpush1.bf16.msra.mxu0 %v3781_v40  ;;  %3652 = vmatpush3.bf16.msra.mxu1 %v3784_v41  ;;  %v3831_v40 = vld [vmem:[%s5327_s3 + $0x60] ss:$16 sps:$4 sm:$0xff] (!%p3335_p7)  }
  0x3e   : > { %838 = vmatprep.subr.bf16.mxu0 %v3787_v42  ;;  %3653 = vmatprep.subr.bf16.mxu1 %v4241_v38  ;;  %v3832_v41 = vld [vmem:[%s5327_s3 + $0x260] ss:$16 sps:$4 sm:$0xff] (!%p3335_p7)   ;;  %v3833_v42 = vld [vmem:[%s5327_s3 + $0x84] ss:$16 sps:$4 sm:$0xff] (!%p3335_p7)  }
  0x41   : > { %839 = vmatpush1.bf16.msra.mxu0 %v3785_v43  ;;  %3654 = vmatpush3.bf16.msra.mxu1 %v3788_v44  ;;  %v3835_v43 = vld [vmem:[%s5327_s3 + $0x284] ss:$16 sps:$4 sm:$0xff] (!%p3335_p7)   ;;  %v3837_v44 = vld [vmem:[%s5327_s3 + $0x80] ss:$16 sps:$4 sm:$0xff] (!%p3335_p7)  }
  0x42   : > { %840 = vmatprep.subr.bf16.mxu0 %v3791_v45  ;;  %3655 = vmatprep.subr.bf16.mxu1 %v4241_v38  ;;  %v3838_v45 = vld [vmem:[%s5327_s3 + $0x280] ss:$16 sps:$4 sm:$0xff] (!%p3335_p7)  }
  0x45   : > { %841 = vmatpush1.bf16.msra.mxu0 %v3789_v46  ;;  %3656 = vmatpush3.bf16.msra.mxu1 %v3792_v47  ;;  %v3839_v46 = vld [vmem:[%s5327_s3 + $0xa4] ss:$16 sps:$4 sm:$0xff] (!%p3335_p7)  }
  0x46   : > { %842 = vmatprep.subr.bf16.mxu0 %v3795_v48  ;;  %3657 = vmatprep.subr.bf16.mxu1 %v4241_v38  ;;  %v3841_v47 = vld [vmem:[%s5327_s3 + $0x2a4] ss:$16 sps:$4 sm:$0xff] (!%p3335_p7)   ;;  %v3843_v48 = vld [vmem:[%s5327_s3 + $0xa0] ss:$16 sps:$4 sm:$0xff] (!%p3335_p7)  }
  0x49   : > { %843 = vmatpush1.bf16.msra.mxu0 %v3793_v49  ;;  %3658 = vmatpush3.bf16.msra.mxu1 %v3796_v50  ;;  %v3844_v49 = vld [vmem:[%s5327_s3 + $0x2a0] ss:$16 sps:$4 sm:$0xff] (!%p3335_p7)   ;;  %v3845_v50 = vld [vmem:[%s5327_s3 + $0xc4] ss:$16 sps:$4 sm:$0xff] (!%p3335_p7)  }
  0x4a   : > { %844 = vmatprep.subr.bf16.mxu0 %v3799_v51  ;;  %3659 = vmatprep.subr.bf16.mxu1 %v4241_v38  ;;  %v3847_v51 = vld [vmem:[%s5327_s3 + $0x2c4] ss:$16 sps:$4 sm:$0xff] (!%p3335_p7)  }
  0x4d   : > { %845 = vmatpush1.bf16.msra.mxu0 %v3797_v52  ;;  %3660 = vmatpush3.bf16.msra.mxu1 %v3800_v53  ;;  %v3849_v52 = vld [vmem:[%s5327_s3 + $0xc0] ss:$16 sps:$4 sm:$0xff] (!%p3335_p7)  }
  0x4e   : > { %846 = vmatprep.subr.bf16.mxu0 %v3803_v54  ;;  %3661 = vmatprep.subr.bf16.mxu1 %v4241_v38  ;;  %v3850_v53 = vld [vmem:[%s5327_s3 + $0x2c0] ss:$16 sps:$4 sm:$0xff] (!%p3335_p7)   ;;  %v3851_v54 = vld [vmem:[%s5327_s3 + $0xe4] ss:$16 sps:$4 sm:$0xff] (!%p3335_p7)  }
  0x51   : > { %847 = vmatpush1.bf16.msra.mxu0 %v3801_v55  ;;  %3662 = vmatpush3.bf16.msra.mxu1 %v3804_v56  ;;  %v3853_v55 = vld [vmem:[%s5327_s3 + $0x2e4] ss:$16 sps:$4 sm:$0xff] (!%p3335_p7)   ;;  %v3855_v56 = vld [vmem:[%s5327_s3 + $0xe0] ss:$16 sps:$4 sm:$0xff] (!%p3335_p7)  }
  0x52   : > { %848 = vmatprep.subr.bf16.mxu0 %v3807_v57  ;;  %3663 = vmatprep.subr.bf16.mxu1 %v4241_v38  ;;  %v3827_v38 = vld [vmem:[%s5327_s3 + $0x64] ss:$16 sps:$4 sm:$0xff] (!%p3335_p7)   ;;  %v3856_v57 = vld [vmem:[%s5327_s3 + $0x2e0] ss:$16 sps:$4 sm:$0xff] (!%p3335_p7)  }
  0x55   : > { %849 = vmatpush1.bf16.msra.mxu0 %v3805_v58  ;;  %3664 = vmatpush3.bf16.msra.mxu1 %v3808_v59  ;;  %v3857_v58 = vld [vmem:[%s5327_s3 + $0x104] ss:$16 sps:$4 sm:$0xff] (!%p3335_p7)  }
  0x56   : > { %2200 = vmatprep.subr.bf16.mxu1 (!%p3335_p7), %v3809_v26  ;;  %2241 = vmatprep.subr.bf16.mxu0 (!%p3335_p7), %v3811_v27  ;;  %v3859_v59 = vld [vmem:[%s5327_s3 + $0x304] ss:$16 sps:$4 sm:$0xff] (!%p3335_p7)   ;;  %v3885_v27 = vld [vmem:[%s5327_s3 + $0x180] ss:$16 sps:$4 sm:$0xff] (!%p3335_p7)  }
  0x58   : > { %867 = vmatmul.mubr.bf16.vlgmr.msra.gmra.mrb[4].mxu0 %v4364_v35  ;;  %3666 = vmatmul.mubr.bf16.vlgmr.msra.gmra.mrb[4].mxu1 %v4364_v35  ;;  %v3823_v35 = vld [vmem:[%s5327_s3 + $0x244] ss:$16 sps:$4 sm:$0xff] (!%p3335_p7)  }
  0x59   : > { %2201 = vmatpush1.bf16.msra.mxu1 (!%p3335_p7), %v3813_v28  ;;  %2242 = vmatpush1.bf16.msra.mxu0 (!%p3335_p7), %v3814_v29 }
  0x5a   : > { %2202 = vmatprep.subr.bf16.mxu1 (!%p3335_p7), %v3815_v30  ;;  %2243 = vmatprep.subr.bf16.mxu0 (!%p3335_p7), %v3817_v31  ;;  %v3886_v30 = vld [vmem:[%s5327_s3 + $0x380] ss:$16 sps:$4 sm:$0xff] (!%p3335_p7)  }
  0x5d   : > { %2203 = vmatpush1.bf16.msra.mxu1 (!%p3335_p7), %v3819_v32  ;;  %2244 = vmatpush1.bf16.msra.mxu0 (!%p3335_p7), %v3820_v33  ;;  %v3887_v33 = vld [vmem:[%s5327_s3 + $0x1a4] ss:$16 sps:$4 sm:$0xff] (!%p3335_p7)  }
  0x5e   : > { %2204 = vmatprep.subr.bf16.mxu1 (!%p3335_p7), %v3821_v34  ;;  %2245 = vmatprep.subr.bf16.mxu0 (!%p3335_p7), %v3823_v35  ;;  %v3889_v34 = vld [vmem:[%s5327_s3 + $0x3a4] ss:$16 sps:$4 sm:$0xff] (!%p3335_p7)   ;;  %v3891_v35 = vld [vmem:[%s5327_s3 + $0x1a0] ss:$16 sps:$4 sm:$0xff] (!%p3335_p7)  }
  0x61   : > { %2205 = vmatpush1.bf16.msra.mxu1 (!%p3335_p7), %v3825_v36  ;;  %2246 = vmatpush1.bf16.msra.mxu0 (!%p3335_p7), %v3826_v37 }
  0x62   : > { %2206 = vmatprep.subr.bf16.mxu1 (!%p3335_p7), %v3827_v38  ;;  %2247 = vmatprep.subr.bf16.mxu0 (!%p3335_p7), %v3829_v39  ;;  %v3892_v38 = vld [vmem:[%s5327_s3 + $0x3a0] ss:$16 sps:$4 sm:$0xff] (!%p3335_p7)  }
  0x65   : > { %2207 = vmatpush1.bf16.msra.mxu1 (!%p3335_p7), %v3831_v40  ;;  %2248 = vmatpush1.bf16.msra.mxu0 (!%p3335_p7), %v3832_v41 }
  0x66   : > { %2208 = vmatprep.subr.bf16.mxu1 (!%p3335_p7), %v3833_v42  ;;  %2249 = vmatprep.subr.bf16.mxu0 (!%p3335_p7), %v3835_v43  ;;  %v3893_v43 = vld [vmem:[%s5327_s3 + $0x1c4] ss:$16 sps:$4 sm:$0xff] (!%p3335_p7)  }
  0x69   : > { %2209 = vmatpush1.bf16.msra.mxu1 (!%p3335_p7), %v3837_v44  ;;  %2250 = vmatpush1.bf16.msra.mxu0 (!%p3335_p7), %v3838_v45  ;;  %v3895_v44 = vld [vmem:[%s5327_s3 + $0x3c4] ss:$16 sps:$4 sm:$0xff] (!%p3335_p7)  }
  0x6a   : > { %2210 = vmatprep.subr.bf16.mxu1 (!%p3335_p7), %v3839_v46  ;;  %2251 = vmatprep.subr.bf16.mxu0 (!%p3335_p7), %v3841_v47  ;;  %v3897_v47 = vld [vmem:[%s5327_s3 + $0x1c0] ss:$16 sps:$4 sm:$0xff] (!%p3335_p7)  }
  0x6d   : > { %2211 = vmatpush1.bf16.msra.mxu1 (!%p3335_p7), %v3843_v48  ;;  %2252 = vmatpush1.bf16.msra.mxu0 (!%p3335_p7), %v3844_v49  ;;  %v3898_v48 = vld [vmem:[%s5327_s3 + $0x3c0] ss:$16 sps:$4 sm:$0xff] (!%p3335_p7)   ;;  %v3899_v49 = vld [vmem:[%s5327_s3 + $0x1e4] ss:$16 sps:$4 sm:$0xff] (!%p3335_p7)  }
  0x6e   : > { %2212 = vmatprep.subr.bf16.mxu1 (!%p3335_p7), %v3845_v50  ;;  %2253 = vmatprep.subr.bf16.mxu0 (!%p3335_p7), %v3847_v51  ;;  %v3901_v50 = vld [vmem:[%s5327_s3 + $0x3e4] ss:$16 sps:$4 sm:$0xff] (!%p3335_p7)  }
  0x71   : > { %2213 = vmatpush1.bf16.msra.mxu1 (!%p3335_p7), %v3849_v52  ;;  %2254 = vmatpush1.bf16.msra.mxu0 (!%p3335_p7), %v3850_v53  ;;  %v3903_v53 = vld [vmem:[%s5327_s3 + $0x1e0] ss:$16 sps:$4 sm:$0xff] (!%p3335_p7)  }
  0x72   : > { %2214 = vmatprep.subr.bf16.mxu1 (!%p3335_p7), %v3851_v54  ;;  %2255 = vmatprep.subr.bf16.mxu0 (!%p3335_p7), %v3853_v55  ;;  %v3904_v54 = vld [vmem:[%s5327_s3 + $0x3e0] ss:$16 sps:$4 sm:$0xff] (!%p3335_p7)   ;;  %v3907_v55 = vld [vmem:[%s5327_s3 + $0x404] ss:$16 sps:$4 sm:$0xff] (!%p3335_p7)  }
  0x75   : > { %2215 = vmatpush1.bf16.msra.mxu1 (!%p3335_p7), %v3855_v56  ;;  %2256 = vmatpush1.bf16.msra.mxu0 (!%p3335_p7), %v3856_v57  ;;  %v3910_v56 = vld [vmem:[%s5327_s3 + $0xc] ss:$16 sps:$4 sm:$0xff] (!%p3335_p7)  }
  0x76   : > { %2216 = vmatprep.subr.bf16.mxu1 (!%p3335_p7), %v3857_v58  ;;  %2257 = vmatprep.subr.bf16.mxu0 (!%p3335_p7), %v3859_v59  ;;  %v3905_v59 = vld [vmem:[%s5327_s3 + $0x400] ss:$16 sps:$4 sm:$0xff] (!%p3335_p7)  }
 0x10b   : > { %v786_v0 = vpop.f32.mrb[0].mxu0  ;;  %v827_v1 = vpop.f32.mrb[0].mxu1 }
 0x10c   : > { %v915_v2 = vadd.f32 %v786_v0, %v392_v60  ;;  %v917_v3 = vadd.f32 %v827_v1, %v394_v61  ;;  %v788_v4 = vpop.f32.mrb[1].mxu0  ;;  %v829_v5 = vpop.f32.mrb[1].mxu1  ;;  %v3861_v60 = vld [vmem:[%s5327_s3 + $0x100] ss:$16 sps:$4 sm:$0xff] (!%p3335_p7)   ;;  %v3865_v0 = vld [vmem:[%s5327_s3 + $0x324] ss:$16 sps:$4 sm:$0xff] (!%p3335_p7)  }
 0x10d   : > { %v916_v6 = vadd.f32 %v788_v4, %v393_v62  ;;  %v918_v7 = vadd.f32 %v829_v5, %v395_v63  ;;  %v790_v8 = vpop.f32.mrb[2].mxu0  ;;  %v831_v9 = vpop.f32.mrb[2].mxu1  ;;  %v3862_v61 = vld [vmem:[%s5327_s3 + $0x300] ss:$16 sps:$4 sm:$0xff] (!%p3335_p7)   ;;  %v3863_v62 = vld [vmem:[%s5327_s3 + $0x124] ss:$16 sps:$4 sm:$0xff] (!%p3335_p7)   ;;  %v943_v63 = vlaneseq (!%p3335_p7)  ;;  %2217 = vmatpush1.bf16.msra.mxu1 (!%p3335_p7), %v3861_v60 }
 0x10e   : > { %922 = vst [vmem:[#allocation2] sm:$0xff] %v915_v2  ;;  %924 = vst [vmem:[#allocation2 + $0x10] sm:$0xff] %v917_v3  ;;  %v791_v10 = vpop.f32.mrb[3].mxu0  ;;  %v832_v11 = vpop.f32.mrb[3].mxu1  ;;  %v3867_v1 = vld [vmem:[%s5327_s3 + $0x120] ss:$16 sps:$4 sm:$0xff] (!%p3335_p7)   ;;  %2258 = vmatpush1.bf16.msra.mxu0 (!%p3335_p7), %v3862_v61  ;;  %2218 = vmatprep.subr.bf16.mxu1 (!%p3335_p7), %v3863_v62 }
 0x10f   : > { %923 = vst [vmem:[#allocation2 + $0x8] sm:$0xff] %v916_v6  ;;  %925 = vst [vmem:[#allocation2 + $0x18] sm:$0xff] %v918_v7  ;;  %v3868_v2 = vld [vmem:[%s5327_s3 + $0x320] ss:$16 sps:$4 sm:$0xff] (!%p3335_p7)   ;;  %v3869_v3 = vld [vmem:[%s5327_s3 + $0x144] ss:$16 sps:$4 sm:$0xff] (!%p3335_p7)   ;;  %2259 = vmatprep.subr.bf16.mxu0 (!%p3335_p7), %v3865_v0 }
 0x110   : > { %v4519_v4 = vshrl.u32 (!%p3335_p7), %v943_v63, 7  ;;  %v3871_v5 = vld [vmem:[%s5327_s3 + $0x344] ss:$16 sps:$4 sm:$0xff] (!%p3335_p7)   ;;  %v3873_v6 = vld [vmem:[%s5327_s3 + $0x140] ss:$16 sps:$4 sm:$0xff] (!%p3335_p7)  }
 0x111   : > { %v3874_v7 = vld [vmem:[%s5327_s3 + $0x340] ss:$16 sps:$4 sm:$0xff] (!%p3335_p7)   ;;  %2219 = vmatpush1.bf16.msra.mxu1 (!%p3335_p7), %v3867_v1  ;;  %v3875_v8 = vld [vmem:[%s5327_s3 + $0x164] ss:$16 sps:$4 sm:$0xff] (!%p3335_p7)   ;;  %v3908_v60 = vld [vmem:[%s5327_s3 + $0x8] ss:$16 sps:$4 sm:$0xff] (!%p3335_p7)  }
 0x112   : > { %2260 = vmatpush1.bf16.msra.mxu0 (!%p3335_p7), %v3868_v2  ;;  %v4534_v9 = vsub.s32 (!%p3335_p7), 1, %v4519_v4  ;;  %v957_v10 = vsub.s32 (!%p3335_p7), 3, %v4519_v4  ;;  %2220 = vmatprep.subr.bf16.mxu1 (!%p3335_p7), %v3869_v3  ;;  %v3877_v11 = vld [vmem:[%s5327_s3 + $0x364] ss:$16 sps:$4 sm:$0xff] (!%p3335_p7)   ;;  %v4574_v28 = vsub.s32 (!%p3335_p7), 0, %v4519_v4  ;;  %v953_v29 = vsub.s32 (!%p3335_p7), 2, %v4519_v4 }
 0x113   : > { %2261 = vmatprep.subr.bf16.mxu0 (!%p3335_p7), %v3871_v5  ;;  %v3913_v61 = vld [vmem:[%s5327_s3 + $0x424] ss:$16 sps:$4 sm:$0xff] (!%p3335_p7)   ;;  %v3916_v62 = vld [vmem:[%s5327_s3 + $0x2c] ss:$16 sps:$4 sm:$0xff] (!%p3335_p7)   ;;  %v3911_v63 = vld [vmem:[%s5327_s3 + $0x420] ss:$16 sps:$4 sm:$0xff] (!%p3335_p7)  }
 0x114   : > { %v3914_v0 = vld [vmem:[%s5327_s3 + $0x28] ss:$16 sps:$4 sm:$0xff] (!%p3335_p7)   ;;  %v3919_v1 = vld [vmem:[%s5327_s3 + $0x444] ss:$16 sps:$4 sm:$0xff] (!%p3335_p7)   ;;  %v3922_v2 = vld [vmem:[%s5327_s3 + $0x4c] ss:$16 sps:$4 sm:$0xff] (!%p3335_p7)  }
 0x115   : > { %2221 = vmatpush1.bf16.msra.mxu1 (!%p3335_p7), %v3873_v6  ;;  %v934_v41 = vld [vmem:[#allocation2] sm:$0xff] (!%p3335_p7)  ;;  %v936_v42 = vld [vmem:[#allocation2 + $0x10] sm:$0xff] (!%p3335_p7)  ;;  %v3920_v5 = vld [vmem:[%s5327_s3 + $0x48] ss:$16 sps:$4 sm:$0xff] (!%p3335_p7)  }
 0x116   : > { %2262 = vmatpush1.bf16.msra.mxu0 (!%p3335_p7), %v3874_v7  ;;  %2222 = vmatprep.subr.bf16.mxu1 (!%p3335_p7), %v3875_v8  ;;  %v3917_v3 = vld [vmem:[%s5327_s3 + $0x440] ss:$16 sps:$4 sm:$0xff] (!%p3335_p7)   ;;  %v3925_v6 = vld [vmem:[%s5327_s3 + $0x464] ss:$16 sps:$4 sm:$0xff] (!%p3335_p7)   ;;  %v3928_v7 = vld [vmem:[%s5327_s3 + $0x6c] ss:$16 sps:$4 sm:$0xff] (!%p3335_p7)  }
 0x117   : > { %2263 = vmatprep.subr.bf16.mxu0 (!%p3335_p7), %v3877_v11  ;;  %v3923_v8 = vld [vmem:[%s5327_s3 + $0x460] ss:$16 sps:$4 sm:$0xff] (!%p3335_p7)   ;;  %v3926_v11 = vld [vmem:[%s5327_s3 + $0x68] ss:$16 sps:$4 sm:$0xff] (!%p3335_p7)  }
 0x129   : > { %933 = sbr.rel (%p3335_p7) target bundleno = 1172 (0x494), region = 64 }
 0x12b   : > { %v868_v15 = vpop.f32.mrb[4].mxu0  ;;  %v909_v16 = vpop.f32.mrb[4].mxu1 }
 0x12c   : > { %v919_v17 = vadd.f32 %v868_v15, %v396_v12  ;;  %v921_v18 = vadd.f32 %v909_v16, %v398_v13  ;;  %v870_v19 = vpop.f32.mrb[5].mxu0  ;;  %v3667_v20 = vpop.f32.mrb[5].mxu1  ;;  %v961_v12 = vsub.s32 (!%p3335_p7), 4, %v4519_v4  ;;  %v3879_v13 = vld [vmem:[%s5327_s3 + $0x160] ss:$16 sps:$4 sm:$0xff] (!%p3335_p7)   ;;  %v969_v15 = vsub.s32 (!%p3335_p7), 6, %v4519_v4 }
 0x12d   : > { %v920_v21 = vadd.f32 %v870_v19, %v397_v14  ;;  %v872_v22 = vpop.f32.mrb[6].mxu0  ;;  %v912_v23 = vpop.f32.mrb[6].mxu1  ;;  %v3880_v14 = vld [vmem:[%s5327_s3 + $0x360] ss:$16 sps:$4 sm:$0xff] (!%p3335_p7)   ;;  %v935_v16 = vld [vmem:[#allocation2 + $0x8] sm:$0xff] (!%p3335_p7)  ;;  %2223 = vmatpush1.bf16.msra.mxu1 (!%p3335_p7), %v3879_v13 }
 0x12e   : > { %926 = vst [vmem:[#allocation2 + $0x20] sm:$0xff] %v919_v17  ;;  %929 = vst.msk [vmem:[#allocation2 + $0x30] sm:$0xff] %vm928_vm2, %v921_v18  ;;  %v873_v24 = vpop.f32.mrb[7].mxu0  ;;  %v3668_v25 = vpop.f32.mrb[7].mxu1  ;;  %v4551_v17 = vld [vmem:[%s5326_s2] sm:$0x7f] (!%p3335_p7)  ;;  %2264 = vmatpush1.bf16.msra.mxu0 (!%p3335_p7), %v3880_v14 }
 0x12f   : > { %927 = vst [vmem:[#allocation2 + $0x28] sm:$0xff] %v920_v21  ;;  %v937_v18 = vld [vmem:[#allocation2 + $0x18] sm:$0xff] (!%p3335_p7)  ;;  %v3881_v19 = vld [vmem:[%s5327_s3 + $0x184] ss:$16 sps:$4 sm:$0xff] (!%p3335_p7)   ;;  %v950_v20 = vrot.slane (!%p3335_p7), %v4551_v17, %v4534_v9  ;;  %v958_v21 = vrot.slane (!%p3335_p7), %v4551_v17, %v957_v10  ;;  %v4565_v23 = vrot.slane (!%p3335_p7), %v4551_v17, %v961_v12  ;;  %v4568_v26 = vrot.slane (!%p3335_p7), %v4551_v17, %v969_v15  ;;  %v3929_v14 = vld [vmem:[%s5327_s3 + $0x480] ss:$16 sps:$4 sm:$0xff] (!%p3335_p7)  }
 0x130   : > { %v3883_v22 = vld [vmem:[%s5327_s3 + $0x384] ss:$16 sps:$4 sm:$0xff]   ;;  %2224 = vmatprep.subr.bf16.mxu1 %v3881_v19  ;;  %v946_v39 = vrot.slane %v4551_v17, %v4574_v28  ;;  %v954_v40 = vrot.slane %v4551_v17, %v953_v29  ;;  %v3934_v13 = vld [vmem:[%s5327_s3 + $0x8c] ss:$16 sps:$4 sm:$0xff]   ;;  %v3932_v15 = vld [vmem:[%s5327_s3 + $0x88] ss:$16 sps:$4 sm:$0xff]  }
 0x131   : > { %v979_v24 = vadd.f32 %v950_v20, %v935_v16  ;;  %v981_v25 = vadd.f32 %v958_v21, %v937_v18  ;;  %2265 = vmatprep.subr.bf16.mxu0 %v3883_v22  ;;  %2225 = vmatpush1.bf16.msra.mxu1 %v3885_v27  ;;  %v3931_v12 = vld [vmem:[%s5327_s3 + $0x484] ss:$16 sps:$4 sm:$0xff]   ;;  %v965_v16 = vsub.s32 5, %v4519_v4  ;;  %v3940_v19 = vld [vmem:[%s5327_s3 + $0xac] ss:$16 sps:$4 sm:$0xff]  }
 0x132   : > { %2266 = vmatpush1.bf16.msra.mxu0 %v3886_v30  ;;  %2226 = vmatprep.subr.bf16.mxu1 %v3887_v33  ;;  %v978_v45 = vadd.f32 %v946_v39, %v934_v41  ;;  %v980_v46 = vadd.f32 %v954_v40, %v936_v42  ;;  %v3937_v18 = vld [vmem:[%s5327_s3 + $0x4a4] ss:$16 sps:$4 sm:$0xff]   ;;  %v3935_v20 = vld [vmem:[%s5327_s3 + $0x4a0] ss:$16 sps:$4 sm:$0xff]   ;;  %v3938_v21 = vld [vmem:[%s5327_s3 + $0xa8] ss:$16 sps:$4 sm:$0xff]  }
 0x133   : > { %v986_v31 = vmax.f32 %v979_v24, 0.0  ;;  %v988_v32 = vmax.f32 %v981_v25, 0.0  ;;  %2267 = vmatprep.subr.bf16.mxu0 %v3889_v34  ;;  %v966_v22 = vrot.slane %v4551_v17, %v965_v16  ;;  %v3943_v24 = vld [vmem:[%s5327_s3 + $0x4c4] ss:$16 sps:$4 sm:$0xff]   ;;  %v3946_v25 = vld [vmem:[%s5327_s3 + $0xcc] ss:$16 sps:$4 sm:$0xff]  }
 0x134   : > { %v985_v51 = vmax.f32 %v978_v45, 0.0  ;;  %v987_v52 = vmax.f32 %v980_v46, 0.0  ;;  %v3941_v27 = vld [vmem:[%s5327_s3 + $0x4c0] ss:$16 sps:$4 sm:$0xff]   ;;  %v3944_v30 = vld [vmem:[%s5327_s3 + $0xc8] ss:$16 sps:$4 sm:$0xff]  }
 0x135   : > { %v993_v36 = vpack.c.bf16 %v986_v31, %v986_v31  ;;  %v4589_v37 = vpack.c.bf16 %v988_v32, %v988_v32  ;;  %2227 = vmatpush1.bf16.msra.mxu1 %v3891_v35  ;;  %v3949_v17 = vld [vmem:[%s5327_s3 + $0x4e4] ss:$16 sps:$4 sm:$0xff]   ;;  %v3952_v33 = vld [vmem:[%s5327_s3 + $0xec] ss:$16 sps:$4 sm:$0xff]   ;;  %v3947_v35 = vld [vmem:[%s5327_s3 + $0x4e0] ss:$16 sps:$4 sm:$0xff]  }
 0x136   : > { %2268 = vmatpush1.bf16.msra.mxu0 %v3892_v38  ;;  %2228 = vmatprep.subr.bf16.mxu1 %v3893_v43  ;;  %v4630_v57 = vpack.c.bf16 %v985_v51, %v985_v51  ;;  %v4632_v58 = vpack.c.bf16 %v987_v52, %v987_v52  ;;  %v939_v31 = vld [vmem:[#allocation2 + $0x28] sm:$0xff]  ;;  %v3955_v39 = vld [vmem:[%s5327_s3 + $0x504] ss:$16 sps:$4 sm:$0xff]   ;;  %v3953_v41 = vld [vmem:[%s5327_s3 + $0x500] ss:$16 sps:$4 sm:$0xff]  }
 0x137   : > { %2232 = vmatprep.mubr.bf16.mxu1 %v993_v36  ;;  %2273 = vmatprep.mubr.bf16.mxu0 %v4589_v37  ;;  %v983_v32 = vadd.f32 %v966_v22, %v939_v31  ;;  %v3958_v40 = vld [vmem:[%s5327_s3 + $0x10c] ss:$16 sps:$4 sm:$0xff]   ;;  %v3956_v42 = vld [vmem:[%s5327_s3 + $0x108] ss:$16 sps:$4 sm:$0xff]   ;;  %v3961_v43 = vld [vmem:[%s5327_s3 + $0x524] ss:$16 sps:$4 sm:$0xff]  }
 0x138   : > { %2269 = vmatprep.subr.bf16.mxu0 %v3895_v44  ;;  %v3964_v44 = vld [vmem:[%s5327_s3 + $0x12c] ss:$16 sps:$4 sm:$0xff]   ;;  %v3959_v45 = vld [vmem:[%s5327_s3 + $0x520] ss:$16 sps:$4 sm:$0xff]   ;;  %v3962_v46 = vld [vmem:[%s5327_s3 + $0x128] ss:$16 sps:$4 sm:$0xff]  }
 0x139   : > { %2229 = vmatpush1.bf16.msra.mxu1 %v3897_v47  ;;  %v990_v34 = vmax.f32 %v983_v32, 0.0  ;;  %v3967_v47 = vld [vmem:[%s5327_s3 + $0x544] ss:$16 sps:$4 sm:$0xff]   ;;  %v3976_v52 = vld [vmem:[%s5327_s3 + $0x16c] ss:$16 sps:$4 sm:$0xff]  }
 0x13a   : > { %2270 = vmatpush1.bf16.msra.mxu0 %v3898_v48  ;;  %2230 = vmatprep.subr.bf16.mxu1 %v3899_v49  ;;  %v3970_v48 = vld [vmem:[%s5327_s3 + $0x14c] ss:$16 sps:$4 sm:$0xff]   ;;  %v3965_v49 = vld [vmem:[%s5327_s3 + $0x540] ss:$16 sps:$4 sm:$0xff]   ;;  %v3973_v51 = vld [vmem:[%s5327_s3 + $0x564] ss:$16 sps:$4 sm:$0xff]  }
 0x13b   : > { %2271 = vmatprep.subr.bf16.mxu0 %v3901_v50  ;;  %v4728_v38 = vpack.c.bf16 %v990_v34, %v990_v34  ;;  %v3968_v50 = vld [vmem:[%s5327_s3 + $0x148] ss:$16 sps:$4 sm:$0xff]   ;;  %v4015_v31 = vld [vmem:[%s5327_s3 + $0x26c] ss:$16 sps:$4 sm:$0xff]   ;;  %v4211_v4 = vld [vmem:[%s5331_s7 + $0x70] sm:$0xff]  }
 0x13c   : > { %v4097_v32 = vld [vmem:[%s5327_s3 + $0x608] ss:$16 sps:$4 sm:$0xff]  }
 0x13d   : > { %2231 = vmatpush1.bf16.msra.mxu1 %v3903_v53  ;;  %v3971_v53 = vld [vmem:[%s5327_s3 + $0x560] ss:$16 sps:$4 sm:$0xff]   ;;  %v4016_v34 = vld [vmem:[%s5327_s3 + $0x288] ss:$16 sps:$4 sm:$0xff]  }
 0x13e   : > { %2272 = vmatpush1.bf16.msra.mxu0 %v3904_v54  ;;  %2364 = vmatprep.subr.bf16.mxu1 %v3910_v56  ;;  %v3974_v54 = vld [vmem:[%s5327_s3 + $0x168] ss:$16 sps:$4 sm:$0xff]   ;;  %v3982_v56 = vld [vmem:[%s5327_s3 + $0x18c] ss:$16 sps:$4 sm:$0xff]  }
 0x13f   : > { %2282 = vmatprep.subr.bf16.mxu0 %v3907_v55  ;;  %v3979_v55 = vld [vmem:[%s5327_s3 + $0x584] ss:$16 sps:$4 sm:$0xff]  }
 0x140   : > { %2233 = vmatmul.mubr.bf16.vlgmr.msra.gmra.mrb[0].mxu1 %v4630_v57 }
 0x141   : > { %2274 = vmatmul.mubr.bf16.vlgmr.msra.gmra.mrb[0].mxu0 %v4632_v58  ;;  %2365 = vmatpush1.bf16.msra.mxu1 %v3908_v60  ;;  %v3980_v60 = vld [vmem:[%s5327_s3 + $0x188] ss:$16 sps:$4 sm:$0xff]  }
 0x142   : > { %2283 = vmatpush1.bf16.msra.mxu0 %v3905_v59  ;;  %2366 = vmatprep.subr.bf16.mxu1 %v3916_v62  ;;  %v3977_v59 = vld [vmem:[%s5327_s3 + $0x580] ss:$16 sps:$4 sm:$0xff]   ;;  %v3988_v62 = vld [vmem:[%s5327_s3 + $0x1ac] ss:$16 sps:$4 sm:$0xff]  }
 0x143   : > { %2284 = vmatprep.subr.bf16.mxu0 %v3913_v61  ;;  %2396 = vmatprep.mubr.bf16.mxu1 %v993_v36  ;;  %v3950_v36 = vld [vmem:[%s5327_s3 + $0xe8] ss:$16 sps:$4 sm:$0xff]   ;;  %v3985_v61 = vld [vmem:[%s5327_s3 + $0x5a4] ss:$16 sps:$4 sm:$0xff]  }
 0x144   : > { %2314 = vmatprep.mubr.bf16.mxu0 %v4728_v38 }
 0x145   : > { %2367 = vmatpush1.bf16.msra.mxu1 %v3914_v0  ;;  %v3986_v0 = vld [vmem:[%s5327_s3 + $0x1a8] ss:$16 sps:$4 sm:$0xff]  }
 0x146   : > { %2285 = vmatpush1.bf16.msra.mxu0 %v3911_v63  ;;  %2368 = vmatprep.subr.bf16.mxu1 %v3922_v2  ;;  %v3983_v63 = vld [vmem:[%s5327_s3 + $0x5a0] ss:$16 sps:$4 sm:$0xff]   ;;  %v3991_v2 = vld [vmem:[%s5327_s3 + $0x5c4] ss:$16 sps:$4 sm:$0xff]  }
 0x147   : > { %2286 = vmatprep.subr.bf16.mxu0 %v3919_v1  ;;  %v938_v1 = vld [vmem:[#allocation2 + $0x20] sm:$0xff] }
 0x149   : > { %2369 = vmatpush1.bf16.msra.mxu1 %v3920_v5  ;;  %v982_v5 = vadd.f32 %v4565_v23, %v938_v1  ;;  %v4000_v23 = vld [vmem:[%s5327_s3 + $0x1ec] ss:$16 sps:$4 sm:$0xff]  }
 0x14a   : > { %2287 = vmatpush1.bf16.msra.mxu0 %v3917_v3  ;;  %2370 = vmatprep.subr.bf16.mxu1 %v3928_v7  ;;  %v3994_v3 = vld [vmem:[%s5327_s3 + $0x1cc] ss:$16 sps:$4 sm:$0xff]   ;;  %v3992_v7 = vld [vmem:[%s5327_s3 + $0x1c8] ss:$16 sps:$4 sm:$0xff]  }
 0x14b   : > { %2288 = vmatprep.subr.bf16.mxu0 %v3925_v6  ;;  %v3989_v6 = vld [vmem:[%s5327_s3 + $0x5c0] ss:$16 sps:$4 sm:$0xff]   ;;  %v4042_v1 = vld [vmem:[%s5327_s3 + $0x38c] ss:$16 sps:$4 sm:$0xff]  }
 0x14d   : > { %2371 = vmatpush1.bf16.msra.mxu1 %v3926_v11  ;;  %v989_v11 = vmax.f32 %v982_v5, 0.0  ;;  %v4121_v5 = vld [vmem:[%s5329_s5 + $0x60] ss:$8 sps:$4 sm:$0xff]  }
 0x14e   : > { %2289 = vmatpush1.bf16.msra.mxu0 %v3923_v8  ;;  %2372 = vmatprep.subr.bf16.mxu1 %v3934_v13  ;;  %v3997_v8 = vld [vmem:[%s5327_s3 + $0x5e4] ss:$16 sps:$4 sm:$0xff]   ;;  %v3998_v13 = vld [vmem:[%s5327_s3 + $0x1e8] ss:$16 sps:$4 sm:$0xff]  }
 0x14f   : > { %2290 = vmatprep.subr.bf16.mxu0 %v3931_v12  ;;  %v3995_v12 = vld [vmem:[%s5327_s3 + $0x5e0] ss:$16 sps:$4 sm:$0xff]   ;;  %v4834_v16 = vpack.c.bf16 %v989_v11, %v989_v11  ;;  %v4048_v11 = vld [vmem:[%s5327_s3 + $0x3cc] ss:$16 sps:$4 sm:$0xff]  }
 0x151   : > { %2373 = vmatpush1.bf16.msra.mxu1 %v3932_v15  ;;  %v4009_v15 = vld [vmem:[%s5327_s3 + $0x604] ss:$16 sps:$4 sm:$0xff]  }
 0x152   : > { %2291 = vmatpush1.bf16.msra.mxu0 %v3929_v14  ;;  %2374 = vmatprep.subr.bf16.mxu1 %v3940_v19  ;;  %v4003_v14 = vld [vmem:[%s5327_s3 + $0x20c] ss:$16 sps:$4 sm:$0xff]   ;;  %v4007_v19 = vld [vmem:[%s5327_s3 + $0x600] ss:$16 sps:$4 sm:$0xff]  }
 0x153   : > { %2292 = vmatprep.subr.bf16.mxu0 %v3937_v18  ;;  %v4001_v18 = vld [vmem:[%s5327_s3 + $0x208] ss:$16 sps:$4 sm:$0xff]  }
 0x155   : > { %2375 = vmatpush1.bf16.msra.mxu1 %v3938_v21  ;;  %v4006_v21 = vld [vmem:[%s5327_s3 + $0x22c] ss:$16 sps:$4 sm:$0xff]  }
 0x156   : > { %2293 = vmatpush1.bf16.msra.mxu0 %v3935_v20  ;;  %2376 = vmatprep.subr.bf16.mxu1 %v3946_v25  ;;  %v940_v20 = vld [vmem:[#allocation2 + $0x30] sm:$0xff]  ;;  %v4099_v25 = vld [vmem:[%s5327_s3 + $0x60c] ss:$16 sps:$4 sm:$0xff]  }
 0x157   : > { %2294 = vmatprep.subr.bf16.mxu0 %v3943_v24  ;;  %v984_v22 = vadd.f32 %v4568_v26, %v940_v20  ;;  %v4004_v24 = vld [vmem:[%s5327_s3 + $0x228] ss:$16 sps:$4 sm:$0xff]  }
 0x158   : > { %v4010_v26 = vld [vmem:[%s5327_s3 + $0x248] ss:$16 sps:$4 sm:$0xff]  }
 0x159   : > { %2377 = vmatpush1.bf16.msra.mxu1 %v3944_v30  ;;  %v4243_v30 = vmov 0   ;;  %v4130_v20 = vld [vmem:[%s5329_s5 + $0x90] ss:$8 sps:$4 sm:$0xff]  }
 0x15a   : > { %2295 = vmatpush1.bf16.msra.mxu0 %v3941_v27  ;;  %2378 = vmatprep.subr.bf16.mxu1 %v3952_v33  ;;  %v4012_v27 = vld [vmem:[%s5327_s3 + $0x24c] ss:$16 sps:$4 sm:$0xff]  }
 0x15b   : > { %2296 = vmatprep.subr.bf16.mxu0 %v3949_v17  ;;  %v4013_v17 = vld [vmem:[%s5327_s3 + $0x268] ss:$16 sps:$4 sm:$0xff]  }
 0x15d   : > { %2379 = vmatpush1.bf16.msra.mxu1 %v3950_v36  ;;  %v4019_v36 = vld [vmem:[%s5327_s3 + $0x2a8] ss:$16 sps:$4 sm:$0xff]  }
 0x15e   : > { %2297 = vmatpush1.bf16.msra.mxu0 %v3947_v35  ;;  %2380 = vmatprep.subr.bf16.mxu1 %v3958_v40  ;;  %v4021_v35 = vld [vmem:[%s5327_s3 + $0x2ac] ss:$16 sps:$4 sm:$0xff]   ;;  %v4022_v40 = vld [vmem:[%s5327_s3 + $0x2c8] ss:$16 sps:$4 sm:$0xff]  }
 0x15f   : > { %2298 = vmatprep.subr.bf16.mxu0 %v3955_v39  ;;  %v4024_v39 = vld [vmem:[%s5327_s3 + $0x2cc] ss:$16 sps:$4 sm:$0xff]  }
 0x161   : > { %2381 = vmatpush1.bf16.msra.mxu1 %v3956_v42  ;;  %v4103_v42 = vld [vmem:[%s5329_s5] ss:$8 sps:$4 sm:$0xff]  }
 0x162   : > { %2299 = vmatpush1.bf16.msra.mxu0 %v3953_v41  ;;  %2382 = vmatprep.subr.bf16.mxu1 %v3964_v44  ;;  %v4027_v41 = vld [vmem:[%s5327_s3 + $0x2ec] ss:$16 sps:$4 sm:$0xff]  }
 0x163   : > { %2300 = vmatprep.subr.bf16.mxu0 %v3961_v43  ;;  %v4105_v43 = vld [vmem:[%s5329_s5 + $0x4] ss:$8 sps:$4 sm:$0xff]   ;;  %v4108_v44 = vld [vmem:[%s5329_s5 + $0x14] ss:$8 sps:$4 sm:$0xff]  }
 0x165   : > { %2383 = vmatpush1.bf16.msra.mxu1 %v3962_v46  ;;  %v4106_v46 = vld [vmem:[%s5329_s5 + $0x10] ss:$8 sps:$4 sm:$0xff]  }
 0x166   : > { %2301 = vmatpush1.bf16.msra.mxu0 %v3959_v45  ;;  %2384 = vmatprep.subr.bf16.mxu1 %v3970_v48  ;;  %v4025_v45 = vld [vmem:[%s5327_s3 + $0x2e8] ss:$16 sps:$4 sm:$0xff]   ;;  %v4111_v48 = vld [vmem:[%s5329_s5 + $0x24] ss:$8 sps:$4 sm:$0xff]  }
 0x167   : > { %2302 = vmatprep.subr.bf16.mxu0 %v3967_v47  ;;  %v4030_v47 = vld [vmem:[%s5327_s3 + $0x30c] ss:$16 sps:$4 sm:$0xff]  }
 0x169   : > { %2385 = vmatpush1.bf16.msra.mxu1 %v3968_v50  ;;  %v4109_v50 = vld [vmem:[%s5329_s5 + $0x20] ss:$8 sps:$4 sm:$0xff]  }
 0x16a   : > { %2303 = vmatpush1.bf16.msra.mxu0 %v3965_v49  ;;  %2386 = vmatprep.subr.bf16.mxu1 %v3976_v52  ;;  %v4028_v49 = vld [vmem:[%s5327_s3 + $0x308] ss:$16 sps:$4 sm:$0xff]   ;;  %v4114_v52 = vld [vmem:[%s5329_s5 + $0x34] ss:$8 sps:$4 sm:$0xff]  }
 0x16b   : > { %2304 = vmatprep.subr.bf16.mxu0 %v3973_v51  ;;  %v4033_v51 = vld [vmem:[%s5327_s3 + $0x32c] ss:$16 sps:$4 sm:$0xff]  }
 0x16d   : > { %2387 = vmatpush1.bf16.msra.mxu1 %v3974_v54  ;;  %v4112_v54 = vld [vmem:[%s5329_s5 + $0x30] ss:$8 sps:$4 sm:$0xff]  }
 0x16e   : > { %2305 = vmatpush1.bf16.msra.mxu0 %v3971_v53  ;;  %2388 = vmatprep.subr.bf16.mxu1 %v3982_v56  ;;  %v4031_v53 = vld [vmem:[%s5327_s3 + $0x328] ss:$16 sps:$4 sm:$0xff]   ;;  %v4117_v56 = vld [vmem:[%s5329_s5 + $0x44] ss:$8 sps:$4 sm:$0xff]  }
 0x16f   : > { %2306 = vmatprep.subr.bf16.mxu0 %v3979_v55  ;;  %v4036_v55 = vld [vmem:[%s5327_s3 + $0x34c] ss:$16 sps:$4 sm:$0xff]  }
 0x171   : > { %2389 = vmatpush1.bf16.msra.mxu1 %v3980_v60  ;;  %v4115_v60 = vld [vmem:[%s5329_s5 + $0x40] ss:$8 sps:$4 sm:$0xff]  }
 0x172   : > { %2307 = vmatpush1.bf16.msra.mxu0 %v3977_v59  ;;  %2390 = vmatprep.subr.bf16.mxu1 %v3988_v62  ;;  %v4034_v59 = vld [vmem:[%s5327_s3 + $0x348] ss:$16 sps:$4 sm:$0xff]   ;;  %v4120_v62 = vld [vmem:[%s5329_s5 + $0x54] ss:$8 sps:$4 sm:$0xff]  }
 0x173   : > { %2308 = vmatprep.subr.bf16.mxu0 %v3985_v61  ;;  %v4039_v61 = vld [vmem:[%s5327_s3 + $0x36c] ss:$16 sps:$4 sm:$0xff]  }
 0x175   : > { %2391 = vmatpush1.bf16.msra.mxu1 %v3986_v0  ;;  %v4118_v0 = vld [vmem:[%s5329_s5 + $0x50] ss:$8 sps:$4 sm:$0xff]  }
 0x176   : > { %2309 = vmatpush1.bf16.msra.mxu0 %v3983_v63  ;;  %2392 = vmatprep.subr.bf16.mxu1 %v3994_v3  ;;  %v4037_v63 = vld [vmem:[%s5327_s3 + $0x368] ss:$16 sps:$4 sm:$0xff]  }
 0x177   : > { %2310 = vmatprep.subr.bf16.mxu0 %v3991_v2  ;;  %v4123_v2 = vld [vmem:[%s5329_s5 + $0x64] ss:$8 sps:$4 sm:$0xff]   ;;  %v4040_v3 = vld [vmem:[%s5327_s3 + $0x388] ss:$16 sps:$4 sm:$0xff]  }
 0x179   : > { %2393 = vmatpush1.bf16.msra.mxu1 %v3992_v7  ;;  %v4126_v7 = vld [vmem:[%s5329_s5 + $0x74] ss:$8 sps:$4 sm:$0xff]  }
 0x17a   : > { %2311 = vmatpush1.bf16.msra.mxu0 %v3989_v6  ;;  %2394 = vmatprep.subr.bf16.mxu1 %v4000_v23  ;;  %v4045_v6 = vld [vmem:[%s5327_s3 + $0x3ac] ss:$16 sps:$4 sm:$0xff]   ;;  %v4124_v23 = vld [vmem:[%s5329_s5 + $0x70] ss:$8 sps:$4 sm:$0xff]  }
 0x17b   : > { %2312 = vmatprep.subr.bf16.mxu0 %v3997_v8  ;;  %v4043_v8 = vld [vmem:[%s5327_s3 + $0x3a8] ss:$16 sps:$4 sm:$0xff]  }
 0x17d   : > { %2395 = vmatpush1.bf16.msra.mxu1 %v3998_v13  ;;  %v4046_v13 = vld [vmem:[%s5327_s3 + $0x3c8] ss:$16 sps:$4 sm:$0xff]  }
 0x17e   : > { %2313 = vmatpush1.bf16.msra.mxu0 %v3995_v12  ;;  %2405 = vmatprep.subr.bf16.mxu1 %v4003_v14  ;;  %v4129_v12 = vld [vmem:[%s5329_s5 + $0x84] ss:$8 sps:$4 sm:$0xff]   ;;  %v4127_v14 = vld [vmem:[%s5329_s5 + $0x80] ss:$8 sps:$4 sm:$0xff]  }
 0x17f   : > { %2323 = vmatprep.subr.bf16.mxu0 %v4009_v15  ;;  %v4051_v15 = vld [vmem:[%s5327_s3 + $0x3ec] ss:$16 sps:$4 sm:$0xff]  }
 0x180   : > { %2397 = vmatmul.mubr.bf16.vlgmr.msra.gmra.mrb[4].mxu1 %v4630_v57  ;;  %v991_v57 = vmax.f32 %v984_v22, 0.0  ;;  %v4135_v22 = vld [vmem:[%s5329_s5 + $0xa4] ss:$8 sps:$4 sm:$0xff]  }
 0x181   : > { %2315 = vmatmul.mubr.bf16.vlgmr.msra.gmra.mrb[0].mxu0 %v4834_v16  ;;  %2406 = vmatpush1.bf16.msra.mxu1 %v4001_v18  ;;  %v4132_v18 = vld [vmem:[%s5329_s5 + $0x94] ss:$8 sps:$4 sm:$0xff]  }
 0x182   : > { %2324 = vmatpush1.bf16.msra.mxu0 %v4007_v19  ;;  %2407 = vmatprep.subr.bf16.mxu1 %v4006_v21  ;;  %v998_v33 = vpack.c.bf16 %v991_v57, %v991_v57  ;;  %v4049_v19 = vld [vmem:[%s5327_s3 + $0x3e8] ss:$16 sps:$4 sm:$0xff]   ;;  %v4054_v21 = vld [vmem:[%s5327_s3 + $0x40c] ss:$16 sps:$4 sm:$0xff]  }
 0x183   : > { %2355 = vmatprep.mubr.bf16.mxu0 %v4243_v30  ;;  %2437 = vmatprep.mubr.bf16.mxu1 %v4589_v37  ;;  %v4018_v37 = vld [vmem:[%s5327_s3 + $0x28c] ss:$16 sps:$4 sm:$0xff]  }
 0x184   : > { %2487 = vmatprep.subr.bf16.mxu0 %v4099_v25  ;;  %v4057_v25 = vld [vmem:[%s5327_s3 + $0x42c] ss:$16 sps:$4 sm:$0xff]  }
 0x185   : > { %2408 = vmatpush1.bf16.msra.mxu1 %v4004_v24  ;;  %v4052_v24 = vld [vmem:[%s5327_s3 + $0x408] ss:$16 sps:$4 sm:$0xff]   ;;  %v4060_v57 = vld [vmem:[%s5327_s3 + $0x44c] ss:$16 sps:$4 sm:$0xff]  }
 0x186   : > { %2409 = vmatprep.subr.bf16.mxu1 %v4012_v27  ;;  %v4133_v27 = vld [vmem:[%s5329_s5 + $0xa0] ss:$8 sps:$4 sm:$0xff]  }
 0x189   : > { %2410 = vmatpush1.bf16.msra.mxu1 %v4010_v26  ;;  %v4055_v26 = vld [vmem:[%s5327_s3 + $0x428] ss:$16 sps:$4 sm:$0xff]  }
 0x18a   : > { %2411 = vmatprep.subr.bf16.mxu1 %v4015_v31  ;;  %v4136_v31 = vld [vmem:[%s5329_s5 + $0xb0] ss:$8 sps:$4 sm:$0xff]  }
 0x18d   : > { %3532 = vmatmul.mubr.msk.bf16.vlgmr.msra.gmra.mrb[0].mxu0 %vm928_vm2, %v998_v33  ;;  %2412 = vmatpush1.bf16.msra.mxu1 %v4013_v17  ;;  %v4063_v17 = vld [vmem:[%s5327_s3 + $0x46c] ss:$16 sps:$4 sm:$0xff]  }
 0x18e   : > { %2488 = vmatpush1.bf16.msra.mxu0 %v4097_v32  ;;  %2413 = vmatprep.subr.bf16.mxu1 %v4018_v37  ;;  %v4139_v32 = vld [vmem:[%s5329_s5 + $0xc0] ss:$8 sps:$4 sm:$0xff]  }
 0x18f   : > { %2519 = vmatprep.mubr.bf16.mxu0 %v4243_v30  ;;  %2932 = vmatprep.subr.bf16.mxu0 %v4105_v43  ;;  %v4138_v30 = vld [vmem:[%s5329_s5 + $0xb4] ss:$8 sps:$4 sm:$0xff]   ;;  %v4061_v37 = vld [vmem:[%s5327_s3 + $0x468] ss:$16 sps:$4 sm:$0xff]  }
 0x190   : > { %v4075_v43 = vld [vmem:[%s5327_s3 + $0x4ec] ss:$16 sps:$4 sm:$0xff]  }
 0x191   : > { %2414 = vmatpush1.bf16.msra.mxu1 %v4016_v34  ;;  %v4066_v34 = vld [vmem:[%s5327_s3 + $0x48c] ss:$16 sps:$4 sm:$0xff]  }
 0x192   : > { %2415 = vmatprep.subr.bf16.mxu1 %v4021_v35  ;;  %v4142_v35 = vld [vmem:[%s5329_s5 + $0xd0] ss:$8 sps:$4 sm:$0xff]  }
 0x195   : > { %3533 = vmatmul.mubr.msk.bf16.vlgmr.msra.gmra.mrb[4].mxu0 %vm928_vm2, %v998_v33  ;;  %2416 = vmatpush1.bf16.msra.mxu1 %v4019_v36  ;;  %v4144_v33 = vld [vmem:[%s5329_s5 + $0xd4] ss:$8 sps:$4 sm:$0xff]   ;;  %v4064_v36 = vld [vmem:[%s5327_s3 + $0x488] ss:$16 sps:$4 sm:$0xff]  }
 0x196   : > { %2417 = vmatprep.subr.bf16.mxu1 %v4024_v39  ;;  %2933 = vmatpush1.bf16.msra.mxu0 %v4103_v42  ;;  %v4069_v39 = vld [vmem:[%s5327_s3 + $0x4ac] ss:$16 sps:$4 sm:$0xff]   ;;  %v4070_v42 = vld [vmem:[%s5327_s3 + $0x4c8] ss:$16 sps:$4 sm:$0xff]  }
 0x197   : > { %2934 = vmatprep.subr.bf16.mxu0 %v4108_v44  ;;  %v4073_v44 = vld [vmem:[%s5327_s3 + $0x4e8] ss:$16 sps:$4 sm:$0xff]  }
 0x199   : > { %2418 = vmatpush1.bf16.msra.mxu1 %v4022_v40  ;;  %v4067_v40 = vld [vmem:[%s5327_s3 + $0x4a8] ss:$16 sps:$4 sm:$0xff]  }
 0x19a   : > { %2419 = vmatprep.subr.bf16.mxu1 %v4027_v41  ;;  %2935 = vmatpush1.bf16.msra.mxu0 %v4106_v46  ;;  %v4072_v41 = vld [vmem:[%s5327_s3 + $0x4cc] ss:$16 sps:$4 sm:$0xff]   ;;  %v4076_v46 = vld [vmem:[%s5327_s3 + $0x508] ss:$16 sps:$4 sm:$0xff]  }
 0x19b   : > { %2936 = vmatprep.subr.bf16.mxu0 %v4111_v48  ;;  %v4147_v48 = vld [vmem:[%s5329_s5 + $0xe4] ss:$8 sps:$4 sm:$0xff]  }
 0x19d   : > { %2420 = vmatpush1.bf16.msra.mxu1 %v4025_v45  ;;  %v4078_v45 = vld [vmem:[%s5327_s3 + $0x50c] ss:$16 sps:$4 sm:$0xff]  }
 0x19e   : > { %2421 = vmatprep.subr.bf16.mxu1 %v4030_v47  ;;  %2937 = vmatpush1.bf16.msra.mxu0 %v4109_v50  ;;  %v4081_v47 = vld [vmem:[%s5327_s3 + $0x52c] ss:$16 sps:$4 sm:$0xff]   ;;  %v4079_v50 = vld [vmem:[%s5327_s3 + $0x528] ss:$16 sps:$4 sm:$0xff]  }
 0x19f   : > { %2938 = vmatprep.subr.bf16.mxu0 %v4114_v52  ;;  %v4150_v52 = vld [vmem:[%s5329_s5 + $0xf4] ss:$8 sps:$4 sm:$0xff]  }
 0x1a1   : > { %2422 = vmatpush1.bf16.msra.mxu1 %v4028_v49  ;;  %v4145_v49 = vld [vmem:[%s5329_s5 + $0xe0] ss:$8 sps:$4 sm:$0xff]  }
 0x1a2   : > { %2423 = vmatprep.subr.bf16.mxu1 %v4033_v51  ;;  %2939 = vmatpush1.bf16.msra.mxu0 %v4112_v54  ;;  %v4084_v51 = vld [vmem:[%s5327_s3 + $0x54c] ss:$16 sps:$4 sm:$0xff]   ;;  %v4082_v54 = vld [vmem:[%s5327_s3 + $0x548] ss:$16 sps:$4 sm:$0xff]  }
 0x1a3   : > { %2940 = vmatprep.subr.bf16.mxu0 %v4117_v56  ;;  %v4153_v56 = vld [vmem:[%s5329_s5 + $0x104] ss:$8 sps:$4 sm:$0xff]  }
 0x1a5   : > { %2424 = vmatpush1.bf16.msra.mxu1 %v4031_v53  ;;  %v4148_v53 = vld [vmem:[%s5329_s5 + $0xf0] ss:$8 sps:$4 sm:$0xff]  }
 0x1a6   : > { %2425 = vmatprep.subr.bf16.mxu1 %v4036_v55  ;;  %2941 = vmatpush1.bf16.msra.mxu0 %v4115_v60  ;;  %v4087_v55 = vld [vmem:[%s5327_s3 + $0x56c] ss:$16 sps:$4 sm:$0xff]  }
 0x1a7   : > { %2942 = vmatprep.subr.bf16.mxu0 %v4120_v62  ;;  %v4090_v60 = vld [vmem:[%s5327_s3 + $0x58c] ss:$16 sps:$4 sm:$0xff]  }
 0x1a8   : > { %v4093_v62 = vld [vmem:[%s5327_s3 + $0x5ac] ss:$16 sps:$4 sm:$0xff]  }
 0x1a9   : > { %2426 = vmatpush1.bf16.msra.mxu1 %v4034_v59  ;;  %v4085_v59 = vld [vmem:[%s5327_s3 + $0x568] ss:$16 sps:$4 sm:$0xff]  }
 0x1aa   : > { %2427 = vmatprep.subr.bf16.mxu1 %v4039_v61  ;;  %2943 = vmatpush1.bf16.msra.mxu0 %v4118_v0  ;;  %v4088_v61 = vld [vmem:[%s5327_s3 + $0x588] ss:$16 sps:$4 sm:$0xff]   ;;  %v4096_v0 = vld [vmem:[%s5327_s3 + $0x5cc] ss:$16 sps:$4 sm:$0xff]  }
 0x1ab   : > { %2944 = vmatprep.subr.bf16.mxu0 %v4123_v2  ;;  %v4102_v2 = vld [vmem:[%s5327_s3 + $0x5ec] ss:$16 sps:$4 sm:$0xff]  }
 0x1ad   : > { %2428 = vmatpush1.bf16.msra.mxu1 %v4037_v63  ;;  %v4091_v63 = vld [vmem:[%s5327_s3 + $0x5a8] ss:$16 sps:$4 sm:$0xff]  }
 0x1ae   : > { %2429 = vmatprep.subr.bf16.mxu1 %v4042_v1  ;;  %2945 = vmatpush1.bf16.msra.mxu0 %v4121_v5  ;;  %v4094_v1 = vld [vmem:[%s5327_s3 + $0x5c8] ss:$16 sps:$4 sm:$0xff]  }
 0x1af   : > { %2946 = vmatprep.subr.bf16.mxu0 %v4126_v7 }
 0x1b1   : > { %2430 = vmatpush1.bf16.msra.mxu1 %v4040_v3  ;;  %v4100_v3 = vld [vmem:[%s5327_s3 + $0x5e8] ss:$16 sps:$4 sm:$0xff]  }
 0x1b2   : > { %2431 = vmatprep.subr.bf16.mxu1 %v4045_v6  ;;  %2947 = vmatpush1.bf16.msra.mxu0 %v4124_v23  ;;  %v5145_v23 = vld [vmem:[%s5328_s4] sm:$0xf] }
 0x1b3   : > { %2948 = vmatprep.subr.bf16.mxu0 %v4129_v12  ;;  %v1204_v12 = vrot.slane %v5145_v23, %v4534_v9 }
 0x1b5   : > { %2432 = vmatpush1.bf16.msra.mxu1 %v4043_v8 }
 0x1b6   : > { %2433 = vmatprep.subr.bf16.mxu1 %v4048_v11  ;;  %2949 = vmatpush1.bf16.msra.mxu0 %v4127_v14  ;;  %v1200_v11 = vrot.slane %v5145_v23, %v4574_v28  ;;  %v4200_v14 = vld [vmem:[%s5331_s7] sm:$0xff]  }
 0x1b7   : > { %2950 = vmatprep.subr.bf16.mxu0 %v4132_v18 }
 0x1b9   : > { %2434 = vmatpush1.bf16.msra.mxu1 %v4046_v13 }
 0x1ba   : > { %2435 = vmatprep.subr.bf16.mxu1 %v4051_v15  ;;  %2951 = vmatpush1.bf16.msra.mxu0 %v4130_v20  ;;  %v4201_v15 = vld [vmem:[%s5331_s7 + $0x48] sm:$0xff]  }
 0x1bb   : > { %2952 = vmatprep.subr.bf16.mxu0 %v4135_v22 }
 0x1bd   : > { %2436 = vmatpush1.bf16.msra.mxu1 %v4049_v19 }
 0x1be   : > { %2446 = vmatprep.subr.bf16.mxu1 %v4054_v21  ;;  %2953 = vmatpush1.bf16.msra.mxu0 %v4133_v27 }
 0x1bf   : > { %2954 = vmatprep.subr.bf16.mxu0 %v4138_v30 }
 0x1c0   : > { %2438 = vmatmul.mubr.bf16.vlgmr.msra.gmra.mrb[4].mxu1 %v4632_v58  ;;  %v4141_v58 = vld [vmem:[%s5329_s5 + $0xc4] ss:$8 sps:$4 sm:$0xff]  }
 0x1c1   : > { %2447 = vmatpush1.bf16.msra.mxu1 %v4052_v24  ;;  %2478 = vmatprep.mubr.bf16.mxu1 %v4728_v38  ;;  %v4058_v38 = vld [vmem:[%s5327_s3 + $0x448] ss:$16 sps:$4 sm:$0xff]  }
 0x1c2   : > { %2448 = vmatprep.subr.bf16.mxu1 %v4057_v25  ;;  %2955 = vmatpush1.bf16.msra.mxu0 %v4136_v31  ;;  %v4202_v25 = vld [vmem:[%s5331_s7 + $0x8] sm:$0xff]  }
 0x1c3   : > { %2956 = vmatprep.subr.bf16.mxu0 %v4141_v58  ;;  %v4151_v58 = vld [vmem:[%s5329_s5 + $0x100] ss:$8 sps:$4 sm:$0xff]  }
 0x1c5   : > { %2449 = vmatpush1.bf16.msra.mxu1 %v4055_v26  ;;  %v4203_v26 = vld [vmem:[%s5331_s7 + $0x50] sm:$0xff]  }
 0x1c6   : > { %2450 = vmatprep.subr.bf16.mxu1 %v4060_v57  ;;  %2957 = vmatpush1.bf16.msra.mxu0 %v4139_v32  ;;  %v4156_v32 = vld [vmem:[%s5329_s5 + $0x114] ss:$8 sps:$4 sm:$0xff]  }
 0x1c7   : > { %2958 = vmatprep.subr.bf16.mxu0 %v4144_v33  ;;  %v4205_v33 = vld [vmem:[%s5331_s7 + $0x58] sm:$0xff]  }
 0x1c9   : > { %2451 = vmatpush1.bf16.msra.mxu1 %v4058_v38  ;;  %v4204_v38 = vld [vmem:[%s5331_s7 + $0x10] sm:$0xff]  }
 0x1ca   : > { %2452 = vmatprep.subr.bf16.mxu1 %v4063_v17  ;;  %2959 = vmatpush1.bf16.msra.mxu0 %v4142_v35  ;;  %v4154_v35 = vld [vmem:[%s5329_s5 + $0x110] ss:$8 sps:$4 sm:$0xff]  }
 0x1cb   : > { %2960 = vmatprep.subr.bf16.mxu0 %v4147_v48  ;;  %v4210_v48 = vld [vmem:[%s5331_s7 + $0x28] sm:$0xff]  }
 0x1cd   : > { %2453 = vmatpush1.bf16.msra.mxu1 %v4061_v37 }
 0x1ce   : > { %2454 = vmatprep.subr.bf16.mxu1 %v4066_v34  ;;  %2961 = vmatpush1.bf16.msra.mxu0 %v4145_v49  ;;  %v4165_v49 = vld [vmem:[%s5329_s5 + $0x144] ss:$8 sps:$4 sm:$0xff]  }
 0x1cf   : > { %2962 = vmatprep.subr.bf16.mxu0 %v4150_v52  ;;  %v4166_v52 = vld [vmem:[%s5329_s5 + $0x150] ss:$8 sps:$4 sm:$0xff]  }
 0x1d1   : > { %2455 = vmatpush1.bf16.msra.mxu1 %v4064_v36 }
 0x1d2   : > { %2456 = vmatprep.subr.bf16.mxu1 %v4069_v39  ;;  %2963 = vmatpush1.bf16.msra.mxu0 %v4148_v53  ;;  %v4206_v39 = vld [vmem:[%s5331_s7 + $0x18] sm:$0xff]   ;;  %v4171_v53 = vld [vmem:[%s5329_s5 + $0x164] ss:$8 sps:$4 sm:$0xff]  }
 0x1d3   : > { %2973 = vmatprep.subr.bf16.mxu0 %v4153_v56  ;;  %v4172_v56 = vld [vmem:[%s5329_s5 + $0x170] ss:$8 sps:$4 sm:$0xff]  }
 0x1d5   : > { %2457 = vmatpush1.bf16.msra.mxu1 %v4067_v40  ;;  %v4159_v40 = vld [vmem:[%s5329_s5 + $0x124] ss:$8 sps:$4 sm:$0xff]  }
 0x1d6   : > { %2458 = vmatprep.subr.bf16.mxu1 %v4072_v41 }
 0x1d9   : > { %2459 = vmatpush1.bf16.msra.mxu1 %v4070_v42  ;;  %v4207_v42 = vld [vmem:[%s5331_s7 + $0x60] sm:$0xff]  }
 0x1da   : > { %2460 = vmatprep.subr.bf16.mxu1 %v4075_v43  ;;  %v4157_v43 = vld [vmem:[%s5329_s5 + $0x120] ss:$8 sps:$4 sm:$0xff]  }
 0x1dd   : > { %2461 = vmatpush1.bf16.msra.mxu1 %v4073_v44  ;;  %v4208_v44 = vld [vmem:[%s5331_s7 + $0x20] sm:$0xff]  }
 0x1de   : > { %2462 = vmatprep.subr.bf16.mxu1 %v4078_v45  ;;  %v4162_v45 = vld [vmem:[%s5329_s5 + $0x134] ss:$8 sps:$4 sm:$0xff]  }
 0x1e1   : > { %2463 = vmatpush1.bf16.msra.mxu1 %v4076_v46  ;;  %v4209_v46 = vld [vmem:[%s5331_s7 + $0x68] sm:$0xff]  }
 0x1e2   : > { %2464 = vmatprep.subr.bf16.mxu1 %v4081_v47  ;;  %v4160_v47 = vld [vmem:[%s5329_s5 + $0x130] ss:$8 sps:$4 sm:$0xff]  }
 0x1e5   : > { %2465 = vmatpush1.bf16.msra.mxu1 %v4079_v50  ;;  %v4163_v50 = vld [vmem:[%s5329_s5 + $0x140] ss:$8 sps:$4 sm:$0xff]  }
 0x1e6   : > { %2466 = vmatprep.subr.bf16.mxu1 %v4084_v51  ;;  %v4168_v51 = vld [vmem:[%s5329_s5 + $0x154] ss:$8 sps:$4 sm:$0xff]  }
 0x1e9   : > { %2467 = vmatpush1.bf16.msra.mxu1 %v4082_v54  ;;  %v4169_v54 = vld [vmem:[%s5329_s5 + $0x160] ss:$8 sps:$4 sm:$0xff]  }
 0x1ea   : > { %2468 = vmatprep.subr.bf16.mxu1 %v4087_v55  ;;  %v4174_v55 = vld [vmem:[%s5329_s5 + $0x174] ss:$8 sps:$4 sm:$0xff]  }
 0x1ed   : > { %2469 = vmatpush1.bf16.msra.mxu1 %v4085_v59  ;;  %v4177_v59 = vld [vmem:[%s5329_s5 + $0x184] ss:$8 sps:$4 sm:$0xff]  }
 0x1ee   : > { %2470 = vmatprep.subr.bf16.mxu1 %v4090_v60  ;;  %v4175_v60 = vld [vmem:[%s5329_s5 + $0x180] ss:$8 sps:$4 sm:$0xff]  }
 0x1f1   : > { %2471 = vmatpush1.bf16.msra.mxu1 %v4088_v61  ;;  %v4180_v61 = vld [vmem:[%s5329_s5 + $0x194] ss:$8 sps:$4 sm:$0xff]  }
 0x1f2   : > { %2472 = vmatprep.subr.bf16.mxu1 %v4093_v62  ;;  %v4178_v62 = vld [vmem:[%s5329_s5 + $0x190] ss:$8 sps:$4 sm:$0xff]  }
 0x1f5   : > { %2473 = vmatpush1.bf16.msra.mxu1 %v4091_v63  ;;  %v4183_v63 = vld [vmem:[%s5329_s5 + $0x1a4] ss:$8 sps:$4 sm:$0xff]  }
 0x1f6   : > { %2474 = vmatprep.subr.bf16.mxu1 %v4096_v0  ;;  %v4181_v0 = vld [vmem:[%s5329_s5 + $0x1a0] ss:$8 sps:$4 sm:$0xff]  }
 0x1f9   : > { %2475 = vmatpush1.bf16.msra.mxu1 %v4094_v1  ;;  %v4186_v1 = vld [vmem:[%s5329_s5 + $0x1b4] ss:$8 sps:$4 sm:$0xff]  }
 0x1fa   : > { %2476 = vmatprep.subr.bf16.mxu1 %v4102_v2  ;;  %v4184_v2 = vld [vmem:[%s5329_s5 + $0x1b0] ss:$8 sps:$4 sm:$0xff]  }
 0x1fd   : > { %2477 = vmatpush1.bf16.msra.mxu1 %v4100_v3  ;;  %v4189_v3 = vld [vmem:[%s5329_s5 + $0x1c4] ss:$8 sps:$4 sm:$0xff]  }
 0x200   : > { %2479 = vmatmul.mubr.bf16.vlgmr.msra.gmra.mrb[4].mxu1 %v4834_v16  ;;  %v4199_v16 = vld [vmem:[%s5331_s7 + $0x40] sm:$0xff]  }
 0x201   : > { %3627 = vmatprep.subr.bf16.mxu1 %v4199_v16  ;;  %v1208_v16 = vrot.slane %v5145_v23, %v953_v29  ;;  %v4213_v29 = vld [vmem:[%s5331_s7 + $0x78] sm:$0xff]  }
 0x202   : > { %3628 = vmatpush3.bf16.msra.mxu1 %v4200_v14  ;;  %v1212_v14 = vrot.slane %v5145_v23, %v957_v10  ;;  %v4212_v10 = vld [vmem:[%s5331_s7 + $0x30] sm:$0xff]   ;;  %v4214_v23 = vld [vmem:[%s5331_s7 + $0x38] sm:$0xff]  }
 0x203   : > { %3629 = vmatprep.subr.bf16.mxu1 %v4201_v15 }
 0x206   : > { %3630 = vmatpush3.bf16.msra.mxu1 %v4202_v25 }
 0x207   : > { %3631 = vmatprep.subr.bf16.mxu1 %v4203_v26 }
 0x20a   : > { %3632 = vmatpush3.bf16.msra.mxu1 %v4204_v38 }
 0x20b   : > { %3633 = vmatprep.subr.bf16.mxu1 %v4205_v33 }
 0x20e   : > { %3634 = vmatpush3.bf16.msra.mxu1 %v4206_v39 }
 0x20f   : > { %3635 = vmatprep.subr.bf16.mxu1 %v4207_v42 }
 0x212   : > { %3636 = vmatpush3.bf16.msra.mxu1 %v4208_v44 }
 0x213   : > { %v2234_v5 = vpop.f32.mrb[0].mxu1  ;;  %3637 = vmatprep.subr.bf16.mxu1 %v4209_v46 }
 0x214   : > { %v2236_v6 = vpop.f32.mrb[1].mxu1  ;;  %v2235_v13 = vadd.f32 %v2234_v5, %v1200_v11  ;;  %v4187_v5 = vld [vmem:[%s5329_s5 + $0x1c0] ss:$8 sps:$4 sm:$0xff]  }
 0x215   : > { %v2238_v7 = vpop.f32.mrb[2].mxu1  ;;  %v2237_v18 = vadd.f32 %v2236_v6, %v1204_v12  ;;  %v4192_v6 = vld [vmem:[%s5329_s5 + $0x1d4] ss:$8 sps:$4 sm:$0xff]   ;;  %v4193_v11 = vld [vmem:[%s5329_s5 + $0x1e0] ss:$8 sps:$4 sm:$0xff]  }
 0x216   : > { %v2239_v8 = vpop.f32.mrb[3].mxu1  ;;  %3638 = vmatpush3.bf16.msra.mxu1 %v4210_v48  ;;  %v4190_v7 = vld [vmem:[%s5329_s5 + $0x1d0] ss:$8 sps:$4 sm:$0xff]   ;;  %v4198_v12 = vld [vmem:[%s5329_s5 + $0x1f4] ss:$8 sps:$4 sm:$0xff]  }
 0x217   : > { %v4195_v8 = vld [vmem:[%s5329_s5 + $0x1e4] ss:$8 sps:$4 sm:$0xff]   ;;  %3639 = vmatprep.subr.bf16.mxu1 %v4211_v4 }
 0x21a   : > { %3640 = vmatpush3.bf16.msra.mxu1 %v4212_v10 }
 0x21b   : > { %3641 = vmatprep.subr.bf16.mxu1 %v4213_v29 }
 0x21e   : > { %3642 = vmatpush3.bf16.msra.mxu1 %v4214_v23 }
 0x260   : > { %v2357_v19 = vpop.f32.mrb[0].mxu0 }
 0x261   : > { %v3670_v20 = vadd.f32 %v2357_v19, %v2235_v13  ;;  %v2359_v21 = vpop.f32.mrb[1].mxu0  ;;  %v4196_v13 = vld [vmem:[%s5329_s5 + $0x1f0] ss:$8 sps:$4 sm:$0xff]  }
 0x262   : > { %v3672_v22 = vadd.f32 %v2359_v21, %v2237_v18  ;;  %v2361_v24 = vpop.f32.mrb[2].mxu0 }
 0x263   : > { %v2528_v27 = vmax.f32 %v3670_v20, 0.0  ;;  %v2362_v30 = vpop.f32.mrb[3].mxu0 }
 0x264   : > { %v2529_v57 = vmax.f32 %v3672_v22, 0.0 }
 0x265   : > { %v2532_v17 = vpack.c.bf16 %v2528_v27, %v2528_v27 }
 0x266   : > { %v2533_v31 = vpack.c.bf16 %v2529_v57, %v2529_v57 }
 0x268   : > { %2964 = vmatprep.mubr.bf16.mxu0 %v2533_v31  ;;  %v5178_v37 = vpop.f32.mrb[4].mxu0  ;;  %v2600_v31 = vld [vmem:[%s5330_s6] sm:$0x3] }
 0x269   : > { %2965 = vmatmul.mubr.bf16.vlgmr.msra.gmra.mrb[8].mxu0 %v2532_v17  ;;  %v5180_v34 = vpop.f32.mrb[5].mxu0  ;;  %v2609_v38 = vrot.slane %v2600_v31, %v4534_v9 }
 0x26a   : > { %2974 = vmatpush1.bf16.msra.mxu0 %v4151_v58  ;;  %v2525_v36 = vpop.f32.mrb[6].mxu0  ;;  %v2605_v58 = vrot.slane %v2600_v31, %v4574_v28 }
 0x26b   : > { %2975 = vmatprep.subr.bf16.mxu0 %v4156_v32  ;;  %v2526_v41 = vpop.f32.mrb[7].mxu0 }
 0x26e   : > { %2976 = vmatpush1.bf16.msra.mxu0 %v4154_v35 }
 0x26f   : > { %2977 = vmatprep.subr.bf16.mxu0 %v4159_v40 }
 0x272   : > { %2978 = vmatpush1.bf16.msra.mxu0 %v4157_v43  ;;  %v3598_v43 = vld [vmem:[%s5332_s8] ss:$0 sm:$0xff] }
 0x273   : > { %2979 = vmatprep.subr.bf16.mxu0 %v4162_v45 }
 0x276   : > { %2980 = vmatpush1.bf16.msra.mxu0 %v4160_v47 }
 0x277   : > { %2981 = vmatprep.subr.bf16.mxu0 %v4165_v49 }
 0x27a   : > { %2982 = vmatpush1.bf16.msra.mxu0 %v4163_v50 }
 0x27b   : > { %2983 = vmatprep.subr.bf16.mxu0 %v4168_v51 }
 0x27e   : > { %2984 = vmatpush1.bf16.msra.mxu0 %v4166_v52 }
 0x27f   : > { %2985 = vmatprep.subr.bf16.mxu0 %v4171_v53 }
 0x282   : > { %2986 = vmatpush1.bf16.msra.mxu0 %v4169_v54 }
 0x283   : > { %2987 = vmatprep.subr.bf16.mxu0 %v4174_v55 }
 0x286   : > { %2988 = vmatpush1.bf16.msra.mxu0 %v4172_v56 }
 0x287   : > { %2989 = vmatprep.subr.bf16.mxu0 %v4177_v59 }
 0x28a   : > { %2990 = vmatpush1.bf16.msra.mxu0 %v4175_v60 }
 0x28b   : > { %2991 = vmatprep.subr.bf16.mxu0 %v4180_v61 }
 0x28e   : > { %2992 = vmatpush1.bf16.msra.mxu0 %v4178_v62 }
 0x28f   : > { %2993 = vmatprep.subr.bf16.mxu0 %v4183_v63 }
 0x292   : > { %2994 = vmatpush1.bf16.msra.mxu0 %v4181_v0 }
 0x293   : > { %2995 = vmatprep.subr.bf16.mxu0 %v4186_v1 }
 0x296   : > { %2996 = vmatpush1.bf16.msra.mxu0 %v4184_v2 }
 0x297   : > { %2997 = vmatprep.subr.bf16.mxu0 %v4189_v3 }
 0x29a   : > { %2998 = vmatpush1.bf16.msra.mxu0 %v4187_v5 }
 0x29b   : > { %2999 = vmatprep.subr.bf16.mxu0 %v4192_v6 }
 0x29e   : > { %3000 = vmatpush1.bf16.msra.mxu0 %v4190_v7 }
 0x29f   : > { %3001 = vmatprep.subr.bf16.mxu0 %v4195_v8 }
 0x2a2   : > { %3002 = vmatpush1.bf16.msra.mxu0 %v4193_v11 }
 0x2a3   : > { %3003 = vmatprep.subr.bf16.mxu0 %v4198_v12 }
 0x2a6   : > { %3004 = vmatpush1.bf16.msra.mxu0 %v4196_v13 }
 0x2d3   : > { %v2480_v15 = vpop.f32.mrb[4].mxu1 }
 0x2d4   : > { %v3673_v18 = vadd.f32 %v2480_v15, %v1208_v16  ;;  %v2482_v19 = vpop.f32.mrb[5].mxu1 }
 0x2d5   : > { %v3675_v20 = vadd.f32 %v2482_v19, %v1212_v14  ;;  %v2484_v21 = vpop.f32.mrb[6].mxu1 }
 0x2d6   : > { %v3674_v22 = vadd.f32 %v3673_v18, %v5178_v37  ;;  %v2485_v24 = vpop.f32.mrb[7].mxu1 }
 0x2d7   : > { %v3676_v25 = vadd.f32 %v3675_v20, %v5180_v34 }
 0x2d8   : > { %v2530_v27 = vmax.f32 %v3674_v22, 0.0 }
 0x2d9   : > { %v2531_v30 = vmax.f32 %v3676_v25, 0.0 }
 0x2da   : > { %v2534_v57 = vpack.c.bf16 %v2530_v27, %v2530_v27 }
 0x2db   : > { %v2535_v26 = vpack.c.bf16 %v2531_v30, %v2531_v30 }
 0x2dd   : > { %3005 = vmatprep.mubr.bf16.mxu0 %v2535_v26 }
 0x2de   : > { %3006 = vmatmul.mubr.bf16.vlgmr.msra.gmra.mrb[8].mxu0 %v2534_v57 }
 0x3b1   : > { %v3007_v17 = vpop.f32.mrb[8].mxu0 }
 0x3b2   : > { %v3677_v32 = vadd.f32 %v3007_v17, %v2605_v58  ;;  %v3009_v33 = vpop.f32.mrb[9].mxu0 }
 0x3b3   : > { %v3678_v37 = vadd.f32 %v3009_v33, %v2609_v38  ;;  %v3011_v34 = vpop.f32.mrb[10].mxu0 }
 0x3b4   : > { %v3014_v35 = vmax.f32 %v3677_v32, 0.0  ;;  %v3012_v36 = vpop.f32.mrb[11].mxu0 }
 0x3b5   : > { %v3015_v39 = vmax.f32 %v3678_v37, 0.0 }
 0x3b6   : > { %v3016_v41 = vpack.c.bf16 %v3014_v35, %v3014_v35 }
 0x3b7   : > { %v3017_v40 = vpack.c.bf16 %v3015_v39, %v3015_v39 }
 0x3b9   : > { %3185 = vmatprep.mubr.bf16.mxu1 %v3017_v40 }
 0x3ba   : > { %3186 = vmatmul.mubr.bf16.vlgmr.msra.gmra.mrb[8].mxu1 %v3016_v41 }
 0x48d   : > { %v3643_v42 = vpop.f32.mrb[8].mxu1 }
 0x48e   : > { %v3644_v28 = vpop.f32.mrb[9].mxu1 }
 0x48f   : > { %v3645_v44 = vadd.f32 %v3644_v28, %v3643_v42  ;;  %v3646_v9 = vpop.f32.mrb[10].mxu1 }
 0x490   : > { %v3647_v45 = vpop.f32.mrb[11].mxu1 }
 0x491   : > { %v3188_v46 = vadd.f32 %v3645_v44, %v3598_v43 }
 0x493   : > { %3193 = vst [vmem:[%s5333_s9] sm:$0xff] %v3188_v46 }
 0x494 PF: > { %s19_s11 = sadd.s32 1, %s4237_s11   ;;  %s5334_s30 = smov %s4233_s10 }
 0x495   : > { %p16_p8 = scmp.ge.s32.totalorder %s19_s11, 5   ;;  %s5335_s10 = smov %s5337_s12 }
 0x497   :  { %18 = sbr.rel (!%p16_p8) target bundleno = 2 (0x2), region = 97 }

</bundles_post_ra>
